<compile_context>
chip_gen: v6e
topology: v6e:2x2x1
jax: 0.10.0
libtpu: 0.0.40
codegen_flags: <defaults>
</compile_context>

<pallas_src>
import functools

import jax
import jax.numpy as jnp
from jax import lax
from jax.experimental import pallas as pl
from jax.experimental.pallas import tpu as pltpu

_NEG_BIG = -1e30  # finite "-inf": exp underflows to exactly 0 in f32


def _round_up(x, m):
    return ((x + m - 1) // m) * m


# ------------------------- fused forward kernel ----------------------------
def _fused_rnn_kernel(
    x_ref,      # (T*TB, E)      bf16  time-major embedded seq (this batch tile)
    wih_ref,    # (E, 4H)        bf16  W_ih^T   gate order i,f,o,g
    whh_ref,    # (H, 4H)        bf16  W_hh^T   gate order i,f,o,g
    bias_ref,   # (1, 4H+D+Cp)   f32   [lstm_b | b1 | b2_padded]
    w1_ref,     # (H, D)         bf16  dense W^T
    w2_ref,     # (D, Cp)        bf16  logits W^T (zero-padded columns)
    out_ref,    # (2, TB, Cp)    f32   [0]=logits  [1]=probs  (lane-dense)
    gx_scr,     # (T*TB, 4H)     f32   scratch: precomputed input projections
    *,
    seq_len,
    tile_b,
    hidden,
    dense_dim,
):
    H = hidden
    TB = tile_b
    D = dense_dim
    G = 4 * H

    lstm_b = bias_ref[:, 0:G]          # static, 128-aligned lane slices: free
    b1 = bias_ref[:, G:G + D]
    b2 = bias_ref[:, G + D:]

    # Input projection for every timestep in a single MXU matmul; the folded
    # LSTM bias is added once here instead of being re-broadcast per step.
    gx_scr[...] = (
        jnp.dot(x_ref[...], wih_ref[...], preferred_element_type=jnp.float32)
        + lstm_b
    )

    def step(t, carry):
        h, c = carry                                     # (TB, H) f32 each
        base = pl.multiple_of(t * TB, TB)
        gates = gx_scr[pl.ds(base, TB), :] + jnp.dot(
            h.astype(whh_ref.dtype), whh_ref[...],
            preferred_element_type=jnp.float32,
        )                                                # (TB, 4H)  i|f|o|g
        sig = jax.nn.sigmoid(gates[:, :3 * H])           # one sigmoid: i,f,o
        g_g = jnp.tanh(gates[:, 3 * H:])                 # one tanh:    g
        i_g = sig[:, 0 * H:1 * H]
        f_g = sig[:, 1 * H:2 * H]
        o_g = sig[:, 2 * H:3 * H]
        c_new = f_g * c + i_g * g_g
        h_new = o_g * jnp.tanh(c_new)
        return h_new, c_new

    h0 = jnp.zeros((TB, H), jnp.float32)
    c0 = jnp.zeros((TB, H), jnp.float32)
    # T is small here; for long sequences use unroll=4..8 + time-chunked
    # pipeline (and a bf16 gx scratch) instead of full unroll / full residency.
    h, _ = lax.fori_loop(0, seq_len, step, (h0, c0), unroll=True)

    # Fused classifier head on the final hidden state.
    dense = (
        jnp.dot(h.astype(w1_ref.dtype), w1_ref[...],
                preferred_element_type=jnp.float32)
        + b1
    )
    relu = jnp.maximum(dense, 0.0)
    logits = (
        jnp.dot(relu.astype(w2_ref.dtype), w2_ref[...],
                preferred_element_type=jnp.float32)
        + b2
    )                                                    # pad columns ~ -1e30
    m = jnp.max(logits, axis=1, keepdims=True)
    e = jnp.exp(logits - m)                              # pad columns -> 0.0
    # exact reciprocal: probs must sum to 1 within tight tolerance
    probs = e * pl.reciprocal(jnp.sum(e, axis=1, keepdims=True), approx=False)

    # Single lane-dense output slab (Cp multiple of 128): unmasked full-width
    # stores, one output DMA.
    out_ref[0] = logits
    out_ref[1] = probs


def _fused_forward(x_tiles, wih_t, whh_t, bias, w1_t, w2_t,
                   *, seq_len, tile_b, n_tiles):
    _, TBt, E = x_tiles.shape          # TBt == seq_len * tile_b
    H, G = whh_t.shape                 # G == 4H
    D = w1_t.shape[1]
    Cp = w2_t.shape[1]

    kern = functools.partial(
        _fused_rnn_kernel,
        seq_len=seq_len, tile_b=tile_b, hidden=H, dense_dim=D,
    )

    def const(shape):                  # weight blocks resident across the grid
        return pl.BlockSpec(shape, lambda j: (0,) * len(shape))

    return pl.pallas_call(
        kern,
        grid=(n_tiles,),
        out_shape=jax.ShapeDtypeStruct((2, n_tiles * tile_b, Cp), jnp.float32),
        in_specs=[
            pl.BlockSpec((None, TBt, E), lambda j: (j, 0, 0)),   # per-tile x
            const((E, G)),             # W_ih^T
            const((H, G)),             # W_hh^T
            const((1, G + D + Cp)),    # [lstm_b | b1 | b2_pad]
            const((H, D)),             # dense W^T
            const((D, Cp)),            # logits W^T (padded)
        ],
        out_specs=pl.BlockSpec((2, tile_b, Cp), lambda j: (0, j, 0)),
        scratch_shapes=[pltpu.VMEM((TBt, G), jnp.float32)],
        compiler_params=pltpu.CompilerParams(
            dimension_semantics=("parallel",)),
    )(x_tiles, wih_t, whh_t, bias, w1_t, w2_t)


# ------------------------------- module -----------------------------------
def rnn_classifier_forward(params, inp, mask):
    """inp: (B, T) int32 token ids; mask unused (matches the torch forward)."""
    del mask  # torch forward builds it but never uses it
    B, T = inp.shape
    C = params["b2"].shape[1]

    # Embedding gather in plain JAX glue (data-dependent indexing).
    embeds = params["embeddings"][inp]                    # (B, T, E) f32
    E = embeds.shape[-1]

    # Pad batch to 8 sublanes; tile batch into <=128-row tiles so large
    # batches parallelize across TensorCores (v7x) via the parallel grid.
    tile_b = min(_round_up(B, 8), 128)
    Bp = _round_up(B, tile_b)
    n_tiles = Bp // tile_b
    if Bp != B:
        embeds = jnp.pad(embeds, ((0, Bp - B), (0, 0), (0, 0)))

    # Time-major, per batch tile: (n_tiles, T*tile_b, E), bf16 matmul operand.
    x = jnp.transpose(embeds, (1, 0, 2))                  # (T, Bp, E)
    x = x.reshape(T, n_tiles, tile_b, E).transpose(1, 0, 2, 3)
    x = x.reshape(n_tiles, T * tile_b, E).astype(jnp.bfloat16)

    # Lane-dense logits layer: pad class dim to a multiple of 128 with zero
    # weight columns and a very negative bias (those softmax columns -> 0).
    Cp = _round_up(C, 128)
    w2p = jnp.pad(params["w2_t"], ((0, 0), (0, Cp - C)))
    b2p = jnp.pad(params["b2"], ((0, 0), (0, Cp - C)), constant_values=_NEG_BIG)

    # One bias slab -> fewer tiny input DMAs.
    bias = jnp.concatenate([params["lstm_b"], params["b1"], b2p], axis=1)

    out = _fused_forward(
        x,
        params["w_ih_t"].astype(jnp.bfloat16),
        params["w_hh_t"].astype(jnp.bfloat16),
        bias,
        params["w1_t"].astype(jnp.bfloat16),
        w2p.astype(jnp.bfloat16),
        seq_len=T, tile_b=tile_b, n_tiles=n_tiles,
    )
    return out[0, :B, :C], out[1, :B, :C]                 # logits, probs


def init_params(key, vocab_size, embedding_dim, hidden, dense_dim, n_topics):
    # LSTM params are stored pre-transposed: (in, 4H) / (H, 4H), biases folded.
    # Gate column order is (i, f, o, g) — sigmoid gates first, tanh gate last —
    # so the kernel applies one sigmoid over [:, :3H] and one tanh over [:, 3H:].
    # (When importing PyTorch LSTM weights, whose order is i,f,g,o, swap the
    #  last two H-column blocks of W_ih^T, W_hh^T and the bias.)
    ks = jax.random.split(key, 9)
    u = lambda k, shape, s: jax.random.uniform(k, shape, jnp.float32, -s, s)
    sH = 1.0 / jnp.sqrt(hidden)
    return {
        "embeddings": jax.random.normal(ks[0], (vocab_size, embedding_dim),
                                        jnp.float32),
        "w_ih_t": u(ks[1], (embedding_dim, 4 * hidden), sH),
        "w_hh_t": u(ks[2], (hidden, 4 * hidden), sH),
        "lstm_b": u(ks[3], (1, 4 * hidden), sH),          # b_ih + b_hh folded
        "w1_t": u(ks[4], (hidden, dense_dim), sH),
        "b1": u(ks[5], (1, dense_dim), sH),
        "w2_t": u(ks[6], (dense_dim, n_topics), 1.0 / jnp.sqrt(dense_dim)),
        "b2": u(ks[7], (1, n_topics), 1.0 / jnp.sqrt(dense_dim)),
    }


if __name__ == "__main__":
    # Small shapes consistent with the module:
    B, T = 2, 8               # batch, max_sent_length
    vocab_size, E = 50, 32    # vocab, embedding_dim
    H, DENSE, n_topics = 128, 256, 8

    key = jax.random.PRNGKey(0)
    k_p, k_i = jax.random.split(key)
    params = init_params(k_p, vocab_size, E, H, DENSE, n_topics)

    inp = jax.random.randint(k_i, (B, T), 0, vocab_size, dtype=jnp.int32)
    mask = jnp.ones((B, T), dtype=jnp.float32)

    logits, probs = jax.jit(rnn_classifier_forward)(params, inp, mask)
    jax.block_until_ready((logits, probs))

    assert logits.shape == (B, n_topics) and probs.shape == (B, n_topics)
    assert bool(jnp.all(jnp.isfinite(logits))) and bool(jnp.all(jnp.isfinite(probs)))
    assert bool(jnp.allclose(jnp.sum(probs, axis=1), 1.0, atol=1e-5))
    print("KERNEL_OK")
</pallas_src>

<mosaic_0001>
module attributes {stable_mosaic.version = 11 : i64} {
  func.func @_fused_rnn_kernel(%arg0: i32, %arg1: memref<1x64x32xbf16, #tpu.memory_space<vmem>>, %arg2: memref<32x512xbf16, #tpu.memory_space<vmem>>, %arg3: memref<128x512xbf16, #tpu.memory_space<vmem>>, %arg4: memref<1x896xf32, #tpu.memory_space<vmem>>, %arg5: memref<128x256xbf16, #tpu.memory_space<vmem>>, %arg6: memref<256x128xbf16, #tpu.memory_space<vmem>>, %arg7: memref<2x8x128xf32, #tpu.memory_space<vmem>>, %arg8: memref<64x512xf32, #tpu.memory_space<vmem>>) attributes {dimension_semantics = [#tpu.dimension_semantics<parallel>], iteration_bounds = array<i64: 1>, scalar_prefetch = 0 : i64, scratch_operands = 1 : i64, tpu.core_type = #tpu.core_type<tc>, window_params = [{transform_indices = @transform_0, window_bounds = array<i64: 1, 64, 32>}, {pipeline_mode = #tpu.pipeline_mode<synchronous>, transform_indices = @transform_1, window_bounds = array<i64: 32, 512>}, {pipeline_mode = #tpu.pipeline_mode<synchronous>, transform_indices = @transform_2, window_bounds = array<i64: 128, 512>}, {pipeline_mode = #tpu.pipeline_mode<synchronous>, transform_indices = @transform_3, window_bounds = array<i64: 1, 896>}, {pipeline_mode = #tpu.pipeline_mode<synchronous>, transform_indices = @transform_4, window_bounds = array<i64: 128, 256>}, {pipeline_mode = #tpu.pipeline_mode<synchronous>, transform_indices = @transform_5, window_bounds = array<i64: 256, 128>}, {transform_indices = @transform_6, window_bounds = array<i64: 2, 8, 128>}]} {
    %c0 = arith.constant 0 : index
    %c0_0 = arith.constant 0 : index
    %0 = vector.load %arg4[%c0, %c0_0] : memref<1x896xf32, #tpu.memory_space<vmem>>, vector<1x512xf32>
    %c0_1 = arith.constant 0 : index
    %c512 = arith.constant 512 : index
    %1 = vector.load %arg4[%c0_1, %c512] : memref<1x896xf32, #tpu.memory_space<vmem>>, vector<1x256xf32>
    %c0_2 = arith.constant 0 : index
    %c768 = arith.constant 768 : index
    %2 = vector.load %arg4[%c0_2, %c768] : memref<1x896xf32, #tpu.memory_space<vmem>>, vector<1x128xf32>
    %c0_3 = arith.constant 0 : index
    %c0_4 = arith.constant 0 : index
    %c0_5 = arith.constant 0 : index
    %3 = vector.load %arg1[%c0_3, %c0_4, %c0_5] : memref<1x64x32xbf16, #tpu.memory_space<vmem>>, vector<1x64x32xbf16>
    %4 = vector.shape_cast %3 : vector<1x64x32xbf16> to vector<64x32xbf16>
    %c0_6 = arith.constant 0 : index
    %c0_7 = arith.constant 0 : index
    %5 = vector.load %arg2[%c0_6, %c0_7] : memref<32x512xbf16, #tpu.memory_space<vmem>>, vector<32x512xbf16>
    %cst = arith.constant dense<0.000000e+00> : vector<64x512xf32>
    %6 = tpu.matmul %4, %5, %cst {dimension_numbers = #tpu.dot_dimension_numbers<[1], [0], [0], [1], [0, 0, 1, 1], [], []>} : vector<64x32xbf16>, vector<32x512xbf16>, vector<64x512xf32> -> vector<64x512xf32>
    %7 = vector.broadcast %0 : vector<1x512xf32> to vector<64x512xf32>
    %8 = arith.addf %6, %7 : vector<64x512xf32>
    %c0_8 = arith.constant 0 : index
    %c0_9 = arith.constant 0 : index
    %9 = vector.load %arg8[%c0_8, %c0_9] : memref<64x512xf32, #tpu.memory_space<vmem>>, vector<64x512xf32>
    tpu.vector_store %arg8[%c0_8, %c0_9], %8 {strides = array<i32>} : memref<64x512xf32, #tpu.memory_space<vmem>>, vector<64x512xf32>,
    %cst_10 = arith.constant 0.000000e+00 : f32
    %10 = vector.broadcast %cst_10 : f32 to vector<8x128xf32>
    %cst_11 = arith.constant 0.000000e+00 : f32
    %11 = vector.broadcast %cst_11 : f32 to vector<8x128xf32>
    %c0_i32 = arith.constant 0 : i32
    %c8_i32 = arith.constant 8 : i32
    %12 = arith.muli %c0_i32, %c8_i32 : i32
    %13 = tpu.assume_multiple %12, 8 : i32
    %14 = arith.index_cast %13 : i32 to index
    %c0_12 = arith.constant 0 : index
    %15 = vector.load %arg8[%14, %c0_12] : memref<64x512xf32, #tpu.memory_space<vmem>>, vector<8x512xf32>
    %16 = arith.truncf %10 : vector<8x128xf32> to vector<8x128xbf16>
    %c0_13 = arith.constant 0 : index
    %c0_14 = arith.constant 0 : index
    %17 = vector.load %arg3[%c0_13, %c0_14] : memref<128x512xbf16, #tpu.memory_space<vmem>>, vector<128x512xbf16>
    %cst_15 = arith.constant dense<0.000000e+00> : vector<8x512xf32>
    %18 = tpu.matmul %16, %17, %cst_15 {dimension_numbers = #tpu.dot_dimension_numbers<[1], [0], [0], [1], [0, 0, 1, 1], [], []>} : vector<8x128xbf16>, vector<128x512xbf16>, vector<8x512xf32> -> vector<8x512xf32>
    %19 = arith.addf %15, %18 : vector<8x512xf32>
    %20 = vector.extract_strided_slice %19 {offsets = [0, 0], sizes = [8, 384], strides = [1, 1]} : vector<8x512xf32> to vector<8x384xf32>
    %21 = arith.negf %20 : vector<8x384xf32>
    %22 = math.exp %21 : vector<8x384xf32>
    %cst_16 = arith.constant 1.000000e+00 : f32
    %23 = vector.broadcast %cst_16 : f32 to vector<8x384xf32>
    %24 = arith.addf %23, %22 : vector<8x384xf32>
    %25 = arith.divf %23, %24 : vector<8x384xf32>
    %26 = vector.extract_strided_slice %19 {offsets = [0, 384], sizes = [8, 128], strides = [1, 1]} : vector<8x512xf32> to vector<8x128xf32>
    %27 = math.tanh %26 : vector<8x128xf32>
    %28 = vector.extract_strided_slice %25 {offsets = [0, 0], sizes = [8, 128], strides = [1, 1]} : vector<8x384xf32> to vector<8x128xf32>
    %29 = vector.extract_strided_slice %25 {offsets = [0, 128], sizes = [8, 128], strides = [1, 1]} : vector<8x384xf32> to vector<8x128xf32>
    %30 = vector.extract_strided_slice %25 {offsets = [0, 256], sizes = [8, 128], strides = [1, 1]} : vector<8x384xf32> to vector<8x128xf32>
    %31 = arith.mulf %29, %11 : vector<8x128xf32>
    %32 = arith.mulf %28, %27 : vector<8x128xf32>
    %33 = arith.addf %31, %32 : vector<8x128xf32>
    %34 = math.tanh %33 : vector<8x128xf32>
    %35 = arith.mulf %30, %34 : vector<8x128xf32>
    %c1_i32 = arith.constant 1 : i32
    %c8_i32_17 = arith.constant 8 : i32
    %36 = arith.muli %c1_i32, %c8_i32_17 : i32
    %37 = tpu.assume_multiple %36, 8 : i32
    %38 = arith.index_cast %37 : i32 to index
    %c0_18 = arith.constant 0 : index
    %39 = vector.load %arg8[%38, %c0_18] : memref<64x512xf32, #tpu.memory_space<vmem>>, vector<8x512xf32>
    %40 = arith.truncf %35 : vector<8x128xf32> to vector<8x128xbf16>
    %c0_19 = arith.constant 0 : index
    %c0_20 = arith.constant 0 : index
    %41 = vector.load %arg3[%c0_19, %c0_20] : memref<128x512xbf16, #tpu.memory_space<vmem>>, vector<128x512xbf16>
    %cst_21 = arith.constant dense<0.000000e+00> : vector<8x512xf32>
    %42 = tpu.matmul %40, %41, %cst_21 {dimension_numbers = #tpu.dot_dimension_numbers<[1], [0], [0], [1], [0, 0, 1, 1], [], []>} : vector<8x128xbf16>, vector<128x512xbf16>, vector<8x512xf32> -> vector<8x512xf32>
    %43 = arith.addf %39, %42 : vector<8x512xf32>
    %44 = vector.extract_strided_slice %43 {offsets = [0, 0], sizes = [8, 384], strides = [1, 1]} : vector<8x512xf32> to vector<8x384xf32>
    %45 = arith.negf %44 : vector<8x384xf32>
    %46 = math.exp %45 : vector<8x384xf32>
    %cst_22 = arith.constant 1.000000e+00 : f32
    %47 = vector.broadcast %cst_22 : f32 to vector<8x384xf32>
    %48 = arith.addf %47, %46 : vector<8x384xf32>
    %49 = arith.divf %47, %48 : vector<8x384xf32>
    %50 = vector.extract_strided_slice %43 {offsets = [0, 384], sizes = [8, 128], strides = [1, 1]} : vector<8x512xf32> to vector<8x128xf32>
    %51 = math.tanh %50 : vector<8x128xf32>
    %52 = vector.extract_strided_slice %49 {offsets = [0, 0], sizes = [8, 128], strides = [1, 1]} : vector<8x384xf32> to vector<8x128xf32>
    %53 = vector.extract_strided_slice %49 {offsets = [0, 128], sizes = [8, 128], strides = [1, 1]} : vector<8x384xf32> to vector<8x128xf32>
    %54 = vector.extract_strided_slice %49 {offsets = [0, 256], sizes = [8, 128], strides = [1, 1]} : vector<8x384xf32> to vector<8x128xf32>
    %55 = arith.mulf %53, %33 : vector<8x128xf32>
    %56 = arith.mulf %52, %51 : vector<8x128xf32>
    %57 = arith.addf %55, %56 : vector<8x128xf32>
    %58 = math.tanh %57 : vector<8x128xf32>
    %59 = arith.mulf %54, %58 : vector<8x128xf32>
    %c2_i32 = arith.constant 2 : i32
    %c8_i32_23 = arith.constant 8 : i32
    %60 = arith.muli %c2_i32, %c8_i32_23 : i32
    %61 = tpu.assume_multiple %60, 8 : i32
    %62 = arith.index_cast %61 : i32 to index
    %c0_24 = arith.constant 0 : index
    %63 = vector.load %arg8[%62, %c0_24] : memref<64x512xf32, #tpu.memory_space<vmem>>, vector<8x512xf32>
    %64 = arith.truncf %59 : vector<8x128xf32> to vector<8x128xbf16>
    %c0_25 = arith.constant 0 : index
    %c0_26 = arith.constant 0 : index
    %65 = vector.load %arg3[%c0_25, %c0_26] : memref<128x512xbf16, #tpu.memory_space<vmem>>, vector<128x512xbf16>
    %cst_27 = arith.constant dense<0.000000e+00> : vector<8x512xf32>
    %66 = tpu.matmul %64, %65, %cst_27 {dimension_numbers = #tpu.dot_dimension_numbers<[1], [0], [0], [1], [0, 0, 1, 1], [], []>} : vector<8x128xbf16>, vector<128x512xbf16>, vector<8x512xf32> -> vector<8x512xf32>
    %67 = arith.addf %63, %66 : vector<8x512xf32>
    %68 = vector.extract_strided_slice %67 {offsets = [0, 0], sizes = [8, 384], strides = [1, 1]} : vector<8x512xf32> to vector<8x384xf32>
    %69 = arith.negf %68 : vector<8x384xf32>
    %70 = math.exp %69 : vector<8x384xf32>
    %cst_28 = arith.constant 1.000000e+00 : f32
    %71 = vector.broadcast %cst_28 : f32 to vector<8x384xf32>
    %72 = arith.addf %71, %70 : vector<8x384xf32>
    %73 = arith.divf %71, %72 : vector<8x384xf32>
    %74 = vector.extract_strided_slice %67 {offsets = [0, 384], sizes = [8, 128], strides = [1, 1]} : vector<8x512xf32> to vector<8x128xf32>
    %75 = math.tanh %74 : vector<8x128xf32>
    %76 = vector.extract_strided_slice %73 {offsets = [0, 0], sizes = [8, 128], strides = [1, 1]} : vector<8x384xf32> to vector<8x128xf32>
    %77 = vector.extract_strided_slice %73 {offsets = [0, 128], sizes = [8, 128], strides = [1, 1]} : vector<8x384xf32> to vector<8x128xf32>
    %78 = vector.extract_strided_slice %73 {offsets = [0, 256], sizes = [8, 128], strides = [1, 1]} : vector<8x384xf32> to vector<8x128xf32>
    %79 = arith.mulf %77, %57 : vector<8x128xf32>
    %80 = arith.mulf %76, %75 : vector<8x128xf32>
    %81 = arith.addf %79, %80 : vector<8x128xf32>
    %82 = math.tanh %81 : vector<8x128xf32>
    %83 = arith.mulf %78, %82 : vector<8x128xf32>
    %c3_i32 = arith.constant 3 : i32
    %c8_i32_29 = arith.constant 8 : i32
    %84 = arith.muli %c3_i32, %c8_i32_29 : i32
    %85 = tpu.assume_multiple %84, 8 : i32
    %86 = arith.index_cast %85 : i32 to index
    %c0_30 = arith.constant 0 : index
    %87 = vector.load %arg8[%86, %c0_30] : memref<64x512xf32, #tpu.memory_space<vmem>>, vector<8x512xf32>
    %88 = arith.truncf %83 : vector<8x128xf32> to vector<8x128xbf16>
    %c0_31 = arith.constant 0 : index
    %c0_32 = arith.constant 0 : index
    %89 = vector.load %arg3[%c0_31, %c0_32] : memref<128x512xbf16, #tpu.memory_space<vmem>>, vector<128x512xbf16>
    %cst_33 = arith.constant dense<0.000000e+00> : vector<8x512xf32>
    %90 = tpu.matmul %88, %89, %cst_33 {dimension_numbers = #tpu.dot_dimension_numbers<[1], [0], [0], [1], [0, 0, 1, 1], [], []>} : vector<8x128xbf16>, vector<128x512xbf16>, vector<8x512xf32> -> vector<8x512xf32>
    %91 = arith.addf %87, %90 : vector<8x512xf32>
    %92 = vector.extract_strided_slice %91 {offsets = [0, 0], sizes = [8, 384], strides = [1, 1]} : vector<8x512xf32> to vector<8x384xf32>
    %93 = arith.negf %92 : vector<8x384xf32>
    %94 = math.exp %93 : vector<8x384xf32>
    %cst_34 = arith.constant 1.000000e+00 : f32
    %95 = vector.broadcast %cst_34 : f32 to vector<8x384xf32>
    %96 = arith.addf %95, %94 : vector<8x384xf32>
    %97 = arith.divf %95, %96 : vector<8x384xf32>
    %98 = vector.extract_strided_slice %91 {offsets = [0, 384], sizes = [8, 128], strides = [1, 1]} : vector<8x512xf32> to vector<8x128xf32>
    %99 = math.tanh %98 : vector<8x128xf32>
    %100 = vector.extract_strided_slice %97 {offsets = [0, 0], sizes = [8, 128], strides = [1, 1]} : vector<8x384xf32> to vector<8x128xf32>
    %101 = vector.extract_strided_slice %97 {offsets = [0, 128], sizes = [8, 128], strides = [1, 1]} : vector<8x384xf32> to vector<8x128xf32>
    %102 = vector.extract_strided_slice %97 {offsets = [0, 256], sizes = [8, 128], strides = [1, 1]} : vector<8x384xf32> to vector<8x128xf32>
    %103 = arith.mulf %101, %81 : vector<8x128xf32>
    %104 = arith.mulf %100, %99 : vector<8x128xf32>
    %105 = arith.addf %103, %104 : vector<8x128xf32>
    %106 = math.tanh %105 : vector<8x128xf32>
    %107 = arith.mulf %102, %106 : vector<8x128xf32>
    %c4_i32 = arith.constant 4 : i32
    %c8_i32_35 = arith.constant 8 : i32
    %108 = arith.muli %c4_i32, %c8_i32_35 : i32
    %109 = tpu.assume_multiple %108, 8 : i32
    %110 = arith.index_cast %109 : i32 to index
    %c0_36 = arith.constant 0 : index
    %111 = vector.load %arg8[%110, %c0_36] : memref<64x512xf32, #tpu.memory_space<vmem>>, vector<8x512xf32>
    %112 = arith.truncf %107 : vector<8x128xf32> to vector<8x128xbf16>
    %c0_37 = arith.constant 0 : index
    %c0_38 = arith.constant 0 : index
    %113 = vector.load %arg3[%c0_37, %c0_38] : memref<128x512xbf16, #tpu.memory_space<vmem>>, vector<128x512xbf16>
    %cst_39 = arith.constant dense<0.000000e+00> : vector<8x512xf32>
    %114 = tpu.matmul %112, %113, %cst_39 {dimension_numbers = #tpu.dot_dimension_numbers<[1], [0], [0], [1], [0, 0, 1, 1], [], []>} : vector<8x128xbf16>, vector<128x512xbf16>, vector<8x512xf32> -> vector<8x512xf32>
    %115 = arith.addf %111, %114 : vector<8x512xf32>
    %116 = vector.extract_strided_slice %115 {offsets = [0, 0], sizes = [8, 384], strides = [1, 1]} : vector<8x512xf32> to vector<8x384xf32>
    %117 = arith.negf %116 : vector<8x384xf32>
    %118 = math.exp %117 : vector<8x384xf32>
    %cst_40 = arith.constant 1.000000e+00 : f32
    %119 = vector.broadcast %cst_40 : f32 to vector<8x384xf32>
    %120 = arith.addf %119, %118 : vector<8x384xf32>
    %121 = arith.divf %119, %120 : vector<8x384xf32>
    %122 = vector.extract_strided_slice %115 {offsets = [0, 384], sizes = [8, 128], strides = [1, 1]} : vector<8x512xf32> to vector<8x128xf32>
    %123 = math.tanh %122 : vector<8x128xf32>
    %124 = vector.extract_strided_slice %121 {offsets = [0, 0], sizes = [8, 128], strides = [1, 1]} : vector<8x384xf32> to vector<8x128xf32>
    %125 = vector.extract_strided_slice %121 {offsets = [0, 128], sizes = [8, 128], strides = [1, 1]} : vector<8x384xf32> to vector<8x128xf32>
    %126 = vector.extract_strided_slice %121 {offsets = [0, 256], sizes = [8, 128], strides = [1, 1]} : vector<8x384xf32> to vector<8x128xf32>
    %127 = arith.mulf %125, %105 : vector<8x128xf32>
    %128 = arith.mulf %124, %123 : vector<8x128xf32>
    %129 = arith.addf %127, %128 : vector<8x128xf32>
    %130 = math.tanh %129 : vector<8x128xf32>
    %131 = arith.mulf %126, %130 : vector<8x128xf32>
    %c5_i32 = arith.constant 5 : i32
    %c8_i32_41 = arith.constant 8 : i32
    %132 = arith.muli %c5_i32, %c8_i32_41 : i32
    %133 = tpu.assume_multiple %132, 8 : i32
    %134 = arith.index_cast %133 : i32 to index
    %c0_42 = arith.constant 0 : index
    %135 = vector.load %arg8[%134, %c0_42] : memref<64x512xf32, #tpu.memory_space<vmem>>, vector<8x512xf32>
    %136 = arith.truncf %131 : vector<8x128xf32> to vector<8x128xbf16>
    %c0_43 = arith.constant 0 : index
    %c0_44 = arith.constant 0 : index
    %137 = vector.load %arg3[%c0_43, %c0_44] : memref<128x512xbf16, #tpu.memory_space<vmem>>, vector<128x512xbf16>
    %cst_45 = arith.constant dense<0.000000e+00> : vector<8x512xf32>
    %138 = tpu.matmul %136, %137, %cst_45 {dimension_numbers = #tpu.dot_dimension_numbers<[1], [0], [0], [1], [0, 0, 1, 1], [], []>} : vector<8x128xbf16>, vector<128x512xbf16>, vector<8x512xf32> -> vector<8x512xf32>
    %139 = arith.addf %135, %138 : vector<8x512xf32>
    %140 = vector.extract_strided_slice %139 {offsets = [0, 0], sizes = [8, 384], strides = [1, 1]} : vector<8x512xf32> to vector<8x384xf32>
    %141 = arith.negf %140 : vector<8x384xf32>
    %142 = math.exp %141 : vector<8x384xf32>
    %cst_46 = arith.constant 1.000000e+00 : f32
    %143 = vector.broadcast %cst_46 : f32 to vector<8x384xf32>
    %144 = arith.addf %143, %142 : vector<8x384xf32>
    %145 = arith.divf %143, %144 : vector<8x384xf32>
    %146 = vector.extract_strided_slice %139 {offsets = [0, 384], sizes = [8, 128], strides = [1, 1]} : vector<8x512xf32> to vector<8x128xf32>
    %147 = math.tanh %146 : vector<8x128xf32>
    %148 = vector.extract_strided_slice %145 {offsets = [0, 0], sizes = [8, 128], strides = [1, 1]} : vector<8x384xf32> to vector<8x128xf32>
    %149 = vector.extract_strided_slice %145 {offsets = [0, 128], sizes = [8, 128], strides = [1, 1]} : vector<8x384xf32> to vector<8x128xf32>
    %150 = vector.extract_strided_slice %145 {offsets = [0, 256], sizes = [8, 128], strides = [1, 1]} : vector<8x384xf32> to vector<8x128xf32>
    %151 = arith.mulf %149, %129 : vector<8x128xf32>
    %152 = arith.mulf %148, %147 : vector<8x128xf32>
    %153 = arith.addf %151, %152 : vector<8x128xf32>
    %154 = math.tanh %153 : vector<8x128xf32>
    %155 = arith.mulf %150, %154 : vector<8x128xf32>
    %c6_i32 = arith.constant 6 : i32
    %c8_i32_47 = arith.constant 8 : i32
    %156 = arith.muli %c6_i32, %c8_i32_47 : i32
    %157 = tpu.assume_multiple %156, 8 : i32
    %158 = arith.index_cast %157 : i32 to index
    %c0_48 = arith.constant 0 : index
    %159 = vector.load %arg8[%158, %c0_48] : memref<64x512xf32, #tpu.memory_space<vmem>>, vector<8x512xf32>
    %160 = arith.truncf %155 : vector<8x128xf32> to vector<8x128xbf16>
    %c0_49 = arith.constant 0 : index
    %c0_50 = arith.constant 0 : index
    %161 = vector.load %arg3[%c0_49, %c0_50] : memref<128x512xbf16, #tpu.memory_space<vmem>>, vector<128x512xbf16>
    %cst_51 = arith.constant dense<0.000000e+00> : vector<8x512xf32>
    %162 = tpu.matmul %160, %161, %cst_51 {dimension_numbers = #tpu.dot_dimension_numbers<[1], [0], [0], [1], [0, 0, 1, 1], [], []>} : vector<8x128xbf16>, vector<128x512xbf16>, vector<8x512xf32> -> vector<8x512xf32>
    %163 = arith.addf %159, %162 : vector<8x512xf32>
    %164 = vector.extract_strided_slice %163 {offsets = [0, 0], sizes = [8, 384], strides = [1, 1]} : vector<8x512xf32> to vector<8x384xf32>
    %165 = arith.negf %164 : vector<8x384xf32>
    %166 = math.exp %165 : vector<8x384xf32>
    %cst_52 = arith.constant 1.000000e+00 : f32
    %167 = vector.broadcast %cst_52 : f32 to vector<8x384xf32>
    %168 = arith.addf %167, %166 : vector<8x384xf32>
    %169 = arith.divf %167, %168 : vector<8x384xf32>
    %170 = vector.extract_strided_slice %163 {offsets = [0, 384], sizes = [8, 128], strides = [1, 1]} : vector<8x512xf32> to vector<8x128xf32>
    %171 = math.tanh %170 : vector<8x128xf32>
    %172 = vector.extract_strided_slice %169 {offsets = [0, 0], sizes = [8, 128], strides = [1, 1]} : vector<8x384xf32> to vector<8x128xf32>
    %173 = vector.extract_strided_slice %169 {offsets = [0, 128], sizes = [8, 128], strides = [1, 1]} : vector<8x384xf32> to vector<8x128xf32>
    %174 = vector.extract_strided_slice %169 {offsets = [0, 256], sizes = [8, 128], strides = [1, 1]} : vector<8x384xf32> to vector<8x128xf32>
    %175 = arith.mulf %173, %153 : vector<8x128xf32>
    %176 = arith.mulf %172, %171 : vector<8x128xf32>
    %177 = arith.addf %175, %176 : vector<8x128xf32>
    %178 = math.tanh %177 : vector<8x128xf32>
    %179 = arith.mulf %174, %178 : vector<8x128xf32>
    %c7_i32 = arith.constant 7 : i32
    %c8_i32_53 = arith.constant 8 : i32
    %180 = arith.muli %c7_i32, %c8_i32_53 : i32
    %181 = tpu.assume_multiple %180, 8 : i32
    %182 = arith.index_cast %181 : i32 to index
    %c0_54 = arith.constant 0 : index
    %183 = vector.load %arg8[%182, %c0_54] : memref<64x512xf32, #tpu.memory_space<vmem>>, vector<8x512xf32>
    %184 = arith.truncf %179 : vector<8x128xf32> to vector<8x128xbf16>
    %c0_55 = arith.constant 0 : index
    %c0_56 = arith.constant 0 : index
    %185 = vector.load %arg3[%c0_55, %c0_56] : memref<128x512xbf16, #tpu.memory_space<vmem>>, vector<128x512xbf16>
    %cst_57 = arith.constant dense<0.000000e+00> : vector<8x512xf32>
    %186 = tpu.matmul %184, %185, %cst_57 {dimension_numbers = #tpu.dot_dimension_numbers<[1], [0], [0], [1], [0, 0, 1, 1], [], []>} : vector<8x128xbf16>, vector<128x512xbf16>, vector<8x512xf32> -> vector<8x512xf32>
    %187 = arith.addf %183, %186 : vector<8x512xf32>
    %188 = vector.extract_strided_slice %187 {offsets = [0, 0], sizes = [8, 384], strides = [1, 1]} : vector<8x512xf32> to vector<8x384xf32>
    %189 = arith.negf %188 : vector<8x384xf32>
    %190 = math.exp %189 : vector<8x384xf32>
    %cst_58 = arith.constant 1.000000e+00 : f32
    %191 = vector.broadcast %cst_58 : f32 to vector<8x384xf32>
    %192 = arith.addf %191, %190 : vector<8x384xf32>
    %193 = arith.divf %191, %192 : vector<8x384xf32>
    %194 = vector.extract_strided_slice %187 {offsets = [0, 384], sizes = [8, 128], strides = [1, 1]} : vector<8x512xf32> to vector<8x128xf32>
    %195 = math.tanh %194 : vector<8x128xf32>
    %196 = vector.extract_strided_slice %193 {offsets = [0, 0], sizes = [8, 128], strides = [1, 1]} : vector<8x384xf32> to vector<8x128xf32>
    %197 = vector.extract_strided_slice %193 {offsets = [0, 128], sizes = [8, 128], strides = [1, 1]} : vector<8x384xf32> to vector<8x128xf32>
    %198 = vector.extract_strided_slice %193 {offsets = [0, 256], sizes = [8, 128], strides = [1, 1]} : vector<8x384xf32> to vector<8x128xf32>
    %199 = arith.mulf %197, %177 : vector<8x128xf32>
    %200 = arith.mulf %196, %195 : vector<8x128xf32>
    %201 = arith.addf %199, %200 : vector<8x128xf32>
    %202 = math.tanh %201 : vector<8x128xf32>
    %203 = arith.mulf %198, %202 : vector<8x128xf32>
    %c8_i32_59 = arith.constant 8 : i32
    %204 = arith.truncf %203 : vector<8x128xf32> to vector<8x128xbf16>
    %c0_60 = arith.constant 0 : index
    %c0_61 = arith.constant 0 : index
    %205 = vector.load %arg5[%c0_60, %c0_61] : memref<128x256xbf16, #tpu.memory_space<vmem>>, vector<128x256xbf16>
    %cst_62 = arith.constant dense<0.000000e+00> : vector<8x256xf32>
    %206 = tpu.matmul %204, %205, %cst_62 {dimension_numbers = #tpu.dot_dimension_numbers<[1], [0], [0], [1], [0, 0, 1, 1], [], []>} : vector<8x128xbf16>, vector<128x256xbf16>, vector<8x256xf32> -> vector<8x256xf32>
    %207 = vector.broadcast %1 : vector<1x256xf32> to vector<8x256xf32>
    %208 = arith.addf %206, %207 : vector<8x256xf32>
    %cst_63 = arith.constant 0.000000e+00 : f32
    %209 = vector.broadcast %cst_63 : f32 to vector<8x256xf32>
    %210 = arith.maximumf %208, %209 : vector<8x256xf32>
    %211 = arith.truncf %210 : vector<8x256xf32> to vector<8x256xbf16>
    %c0_64 = arith.constant 0 : index
    %c0_65 = arith.constant 0 : index
    %212 = vector.load %arg6[%c0_64, %c0_65] : memref<256x128xbf16, #tpu.memory_space<vmem>>, vector<256x128xbf16>
    %cst_66 = arith.constant dense<0.000000e+00> : vector<8x128xf32>
    %213 = tpu.matmul %211, %212, %cst_66 {dimension_numbers = #tpu.dot_dimension_numbers<[1], [0], [0], [1], [0, 0, 1, 1], [], []>} : vector<8x256xbf16>, vector<256x128xbf16>, vector<8x128xf32> -> vector<8x128xf32>
    %214 = vector.broadcast %2 : vector<1x128xf32> to vector<8x128xf32>
    %215 = arith.addf %213, %214 : vector<8x128xf32>
    %cst_67 = arith.constant dense<0xFF800000> : vector<8xf32>
    %216 = vector.multi_reduction <maximumf>, %215, %cst_67 [1] : vector<8x128xf32> to vector<8xf32>
    %217 = vector.shape_cast %216 : vector<8xf32> to vector<8x1xf32>
    %218 = vector.broadcast %217 : vector<8x1xf32> to vector<8x128xf32>
    %219 = arith.subf %215, %218 : vector<8x128xf32>
    %220 = math.exp %219 : vector<8x128xf32>
    %cst_68 = arith.constant dense<0.000000e+00> : vector<8xf32>
    %221 = vector.multi_reduction <add>, %220, %cst_68 [1] : vector<8x128xf32> to vector<8xf32>
    %222 = vector.shape_cast %221 : vector<8xf32> to vector<8x1xf32>
    %223 = tpu.reciprocal %222 : vector<8x1xf32> -> vector<8x1xf32>
    %224 = vector.broadcast %223 : vector<8x1xf32> to vector<8x128xf32>
    %225 = arith.mulf %220, %224 : vector<8x128xf32>
    %c0_69 = arith.constant 0 : index
    %c0_70 = arith.constant 0 : index
    %c0_71 = arith.constant 0 : index
    %226 = vector.load %arg7[%c0_69, %c0_70, %c0_71] : memref<2x8x128xf32, #tpu.memory_space<vmem>>, vector<1x8x128xf32>
    %227 = vector.shape_cast %226 : vector<1x8x128xf32> to vector<8x128xf32>
    %228 = vector.shape_cast %215 : vector<8x128xf32> to vector<1x8x128xf32>
    tpu.vector_store %arg7[%c0_69, %c0_70, %c0_71], %228 {strides = array<i32>} : memref<2x8x128xf32, #tpu.memory_space<vmem>>, vector<1x8x128xf32>,
    %c1 = arith.constant 1 : index
    %c0_72 = arith.constant 0 : index
    %c0_73 = arith.constant 0 : index
    %229 = vector.load %arg7[%c1, %c0_72, %c0_73] : memref<2x8x128xf32, #tpu.memory_space<vmem>>, vector<1x8x128xf32>
    %230 = vector.shape_cast %229 : vector<1x8x128xf32> to vector<8x128xf32>
    %231 = vector.shape_cast %225 : vector<8x128xf32> to vector<1x8x128xf32>
    tpu.vector_store %arg7[%c1, %c0_72, %c0_73], %231 {strides = array<i32>} : memref<2x8x128xf32, #tpu.memory_space<vmem>>, vector<1x8x128xf32>,
    return
  }
  func.func @transform_0(%arg0: i32) -> (i32, i32, i32) {
    %c0_i32 = arith.constant 0 : i32
    %c0_i32_0 = arith.constant 0 : i32
    %c0_i32_1 = arith.constant 0 : i32
    return %arg0, %c0_i32, %c0_i32_0 : i32, i32, i32
  }
  func.func @transform_1(%arg0: i32) -> (i32, i32) {
    %c0_i32 = arith.constant 0 : i32
    %c0_i32_0 = arith.constant 0 : i32
    %c0_i32_1 = arith.constant 0 : i32
    return %c0_i32, %c0_i32_0 : i32, i32
  }
  func.func @transform_2(%arg0: i32) -> (i32, i32) {
    %c0_i32 = arith.constant 0 : i32
    %c0_i32_0 = arith.constant 0 : i32
    %c0_i32_1 = arith.constant 0 : i32
    return %c0_i32, %c0_i32_0 : i32, i32
  }
  func.func @transform_3(%arg0: i32) -> (i32, i32) {
    %c0_i32 = arith.constant 0 : i32
    %c0_i32_0 = arith.constant 0 : i32
    %c0_i32_1 = arith.constant 0 : i32
    return %c0_i32, %c0_i32_0 : i32, i32
  }
  func.func @transform_4(%arg0: i32) -> (i32, i32) {
    %c0_i32 = arith.constant 0 : i32
    %c0_i32_0 = arith.constant 0 : i32
    %c0_i32_1 = arith.constant 0 : i32
    return %c0_i32, %c0_i32_0 : i32, i32
  }
  func.func @transform_5(%arg0: i32) -> (i32, i32) {
    %c0_i32 = arith.constant 0 : i32
    %c0_i32_0 = arith.constant 0 : i32
    %c0_i32_1 = arith.constant 0 : i32
    return %c0_i32, %c0_i32_0 : i32, i32
  }
  func.func @transform_6(%arg0: i32) -> (i32, i32, i32) {
    %c0_i32 = arith.constant 0 : i32
    %c0_i32_0 = arith.constant 0 : i32
    %c0_i32_1 = arith.constant 0 : i32
    return %c0_i32, %arg0, %c0_i32_0 : i32, i32, i32
  }
}

</mosaic_0001>

<bundles_post_ra>
// kernel: rnn_classifier_forward.1
= control target key start
LH: loop header
LB: loop body
LE: loop exit
PB: predicated region body
PF: predicated region fallthrough
CT: control target
= control target key end

     0   :  { %v3138_v1 = vmov 0   ;;  %vm124_vm0 = vcmask 261120   ;;  %v44_v45 = vlaneseq  ;;  %s3129_s1 = inlined_call_operand.vmem [shape: bf16[32,512], index: 1, kind: input, shape index: {}]   ;;  %s3130_s0 = inlined_call_operand.vmem [shape: bf16[1,64,32], index: 0, kind: input, shape index: {}]   ;;  %s3131_s2 = inlined_call_operand.vmem [shape: bf16[128,512], index: 2, kind: input, shape index: {}]   ;;  %s3132_s3 = inlined_call_operand.vmem [shape: f32[1,896], index: 3, kind: input, shape index: {}]   ;;  %s3133_s4 = inlined_call_operand.vmem [shape: bf16[128,256], index: 4, kind: input, shape index: {}]   ;;  %s3134_s5 = inlined_call_operand.vmem [shape: bf16[256,128], index: 5, kind: input, shape index: {}]   ;;  %s3135_s6 = inlined_call_operand.vmem [shape: f32[2,8,128], index: 6, kind: output, shape index: {}]  }
   0x1   :  { %v1933_v0 = vld [vmem:[%s3129_s1 + $0x24] ss:$16 sps:$4 sm:$0xff]   ;;  %169 = vmatprep.mubr.bf16.mxu0 %v3138_v1  ;;  %242 = vmatprep.mubr.bf16.mxu1 %v3138_v1  ;;  %v1935_v2 = vld [vmem:[%s3129_s1 + $0x2c] ss:$16 sps:$4 sm:$0xff]   ;;  %v1937_v3 = vld [vmem:[%s3129_s1 + $0x20] ss:$16 sps:$4 sm:$0xff]  }
   0x2   :  { %149 = vmatprep.subr.bf16.mxu0 %v1933_v0  ;;  %v1938_v4 = vld [vmem:[%s3129_s1 + $0x28] ss:$16 sps:$4 sm:$0xff]   ;;  %222 = vmatprep.subr.bf16.mxu1 %v1935_v2  ;;  %v1939_v5 = vld [vmem:[%s3129_s1 + $0x4] ss:$16 sps:$4 sm:$0xff]   ;;  %v1941_v6 = vld [vmem:[%s3129_s1 + $0xc] ss:$16 sps:$4 sm:$0xff]  }
   0x3   :  { %150 = vmatpush1.bf16.msra.mxu0 %v1937_v3  ;;  %223 = vmatpush1.bf16.msra.mxu1 %v1938_v4  ;;  %v1943_v7 = vld [vmem:[%s3129_s1] ss:$16 sps:$4 sm:$0xff]   ;;  %v1944_v8 = vld [vmem:[%s3129_s1 + $0x8] ss:$16 sps:$4 sm:$0xff]   ;;  %v2269_v10 = vld [vmem:[%s3131_s2 + $0xe4] ss:$16 sps:$4 sm:$0xff]  }
   0x4   :  { %151 = vmatprep.subr.bf16.mxu0 %v1939_v5  ;;  %224 = vmatprep.subr.bf16.mxu1 %v1941_v6  ;;  %v1945_v9 = vld [vmem:[%s3130_s0] sm:$0xff]   ;;  %v2274_v11 = vld [vmem:[%s3131_s2 + $0xec] ss:$16 sps:$4 sm:$0xff]   ;;  %v2284_v13 = vld [vmem:[%s3131_s2 + $0xe8] ss:$16 sps:$4 sm:$0xff]   ;;  %v2521_v46 = vshrl.u32 %v44_v45, 7 }
   0x5   :  { %v2279_v12 = vld [vmem:[%s3131_s2 + $0xe0] ss:$16 sps:$4 sm:$0xff]   ;;  %v2290_v14 = vld [vmem:[%s3131_s2 + $0xc4] ss:$16 sps:$4 sm:$0xff]   ;;  %v2296_v15 = vld [vmem:[%s3131_s2 + $0xcc] ss:$16 sps:$4 sm:$0xff]  }
   0x6   :  { %v2303_v16 = vld [vmem:[%s3131_s2 + $0xc0] ss:$16 sps:$4 sm:$0xff]   ;;  %v2310_v17 = vld [vmem:[%s3131_s2 + $0xc8] ss:$16 sps:$4 sm:$0xff]   ;;  %v2317_v18 = vld [vmem:[%s3131_s2 + $0xa4] ss:$16 sps:$4 sm:$0xff]  }
   0x7   :  { %152 = vmatpush1.bf16.msra.mxu0 %v1943_v7  ;;  %225 = vmatpush1.bf16.msra.mxu1 %v1944_v8  ;;  %v1958_v19 = vld [vmem:[%s3130_s0 + $0x8] sm:$0xff]   ;;  %v2332_v21 = vld [vmem:[%s3131_s2 + $0xa0] ss:$16 sps:$4 sm:$0xff]   ;;  %v2346_v23 = vld [vmem:[%s3131_s2 + $0x84] ss:$16 sps:$4 sm:$0xff]   ;;  %3142 = vst [vmem:[#allocation3_spill] sm:$0xff] %v2521_v46 }
   0x8   :  { %514 = vmatprep.subr.bf16.mxu0 %v2269_v10  ;;  %555 = vmatprep.subr.bf16.mxu1 %v2274_v11  ;;  %v2327_v20 = vld [vmem:[%s3131_s2 + $0xac] ss:$16 sps:$4 sm:$0xff]   ;;  %v2339_v22 = vld [vmem:[%s3131_s2 + $0xa8] ss:$16 sps:$4 sm:$0xff]   ;;  %v2358_v25 = vld [vmem:[%s3131_s2 + $0x80] ss:$16 sps:$4 sm:$0xff]  }
   0x9   :  { %v2351_v24 = vld [vmem:[%s3131_s2 + $0x8c] ss:$16 sps:$4 sm:$0xff]   ;;  %v2365_v26 = vld [vmem:[%s3131_s2 + $0x88] ss:$16 sps:$4 sm:$0xff]   ;;  %v2372_v27 = vld [vmem:[%s3131_s2 + $0x64] ss:$16 sps:$4 sm:$0xff]  }
   0xa   :  { %1812 = vmatmul.mubr.msk.bf16.vlgmr.msra.gmra.mxu0 %vm124_vm0, %v1945_v9  ;;  %1816 = vmatmul.mubr.msk.bf16.vlgmr.msra.gmra.mxu1 %vm124_vm0, %v1945_v9  ;;  %v2377_v28 = vld [vmem:[%s3131_s2 + $0x6c] ss:$16 sps:$4 sm:$0xff]   ;;  %v1971_v29 = vld [vmem:[%s3130_s0 + $0x10] sm:$0xff]   ;;  %v2392_v31 = vld [vmem:[%s3131_s2 + $0x68] ss:$16 sps:$4 sm:$0xff]   ;;  %v54_v47 = vsub.s32 2, %v2521_v46 }
   0xb   :  { %515 = vmatpush1.bf16.msra.mxu0 %v2279_v12  ;;  %556 = vmatpush1.bf16.msra.mxu1 %v2284_v13  ;;  %v2387_v30 = vld [vmem:[%s3131_s2 + $0x60] ss:$16 sps:$4 sm:$0xff]   ;;  %v2399_v32 = vld [vmem:[%s3131_s2 + $0x44] ss:$16 sps:$4 sm:$0xff]   ;;  %v2406_v33 = vld [vmem:[%s3131_s2 + $0x4c] ss:$16 sps:$4 sm:$0xff]  }
   0xc   :  { %516 = vmatprep.subr.bf16.mxu0 %v2290_v14  ;;  %557 = vmatprep.subr.bf16.mxu1 %v2296_v15  ;;  %v2413_v34 = vld [vmem:[%s3131_s2 + $0x40] ss:$16 sps:$4 sm:$0xff]   ;;  %v2418_v35 = vld [vmem:[%s3131_s2 + $0x48] ss:$16 sps:$4 sm:$0xff]   ;;  %v2425_v36 = vld [vmem:[%s3131_s2 + $0x24] ss:$16 sps:$4 sm:$0xff]  }
   0xd   :  { %179 = vmatprep.mubr.bf16.mxu0 %v3138_v1  ;;  %252 = vmatprep.mubr.bf16.mxu1 %v3138_v1  ;;  %v2432_v37 = vld [vmem:[%s3131_s2 + $0x2c] ss:$16 sps:$4 sm:$0xff]   ;;  %v2444_v39 = vld [vmem:[%s3131_s2 + $0x20] ss:$16 sps:$4 sm:$0xff]   ;;  %v2449_v40 = vld [vmem:[%s3131_s2 + $0x28] ss:$16 sps:$4 sm:$0xff]  }
   0xe   :  { %v1984_v38 = vld [vmem:[%s3130_s0 + $0x18] sm:$0xff]   ;;  %v2456_v41 = vld [vmem:[%s3131_s2 + $0x4] ss:$16 sps:$4 sm:$0xff]   ;;  %v2470_v43 = vld [vmem:[%s3131_s2] ss:$16 sps:$4 sm:$0xff]   ;;  %v3137_v48 = vsub.s32 0, %v2521_v46 }
   0xf   :  { %517 = vmatpush1.bf16.msra.mxu0 %v2303_v16  ;;  %558 = vmatpush1.bf16.msra.mxu1 %v2310_v17  ;;  %v2461_v42 = vld [vmem:[%s3131_s2 + $0xc] ss:$16 sps:$4 sm:$0xff]   ;;  %v2475_v44 = vld [vmem:[%s3131_s2 + $0x8] ss:$16 sps:$4 sm:$0xff]   ;;  %v58_v49 = vsub.s32 3, %v2521_v46  ;;  %v3136_v54 = vsub.s32 1, %v2521_v46 }
  0x10   :  { %518 = vmatprep.subr.bf16.mxu0 %v2317_v18  ;;  %559 = vmatprep.subr.bf16.mxu1 %v2327_v20  ;;  %v24_v50 = vld [vmem:[%s3132_s3] sm:$0xf] }
  0x11   :  { %v2533_v53 = vrot.slane %v24_v50, %v54_v47  ;;  %v47_v57 = vrot.slane %v24_v50, %v3137_v48  ;;  %v2542_v58 = vrot.slane %v24_v50, %v58_v49  ;;  %v51_v61 = vrot.slane %v24_v50, %v3136_v54 }
  0x12   :  { %1813 = vmatmul.mubr.msk.bf16.gmra.mxu0 %vm124_vm0, %v1958_v19  ;;  %1817 = vmatmul.mubr.msk.bf16.gmra.mxu1 %vm124_vm0, %v1958_v19 }
  0x13   :  { %519 = vmatpush1.bf16.msra.mxu0 %v2332_v21  ;;  %560 = vmatpush1.bf16.msra.mxu1 %v2339_v22 }
  0x14   :  { %520 = vmatprep.subr.bf16.mxu0 %v2346_v23  ;;  %561 = vmatprep.subr.bf16.mxu1 %v2351_v24 }
  0x15   :  { %189 = vmatprep.mubr.bf16.mxu0 %v3138_v1  ;;  %262 = vmatprep.mubr.bf16.mxu1 %v3138_v1 }
  0x17   :  { %521 = vmatpush1.bf16.msra.mxu0 %v2358_v25  ;;  %562 = vmatpush1.bf16.msra.mxu1 %v2365_v26 }
  0x18   :  { %522 = vmatprep.subr.bf16.mxu0 %v2372_v27  ;;  %563 = vmatprep.subr.bf16.mxu1 %v2377_v28 }
  0x1a   :  { %1814 = vmatmul.mubr.msk.bf16.gmra.mxu0 %vm124_vm0, %v1971_v29  ;;  %1818 = vmatmul.mubr.msk.bf16.gmra.mxu1 %vm124_vm0, %v1971_v29 }
  0x1b   :  { %523 = vmatpush1.bf16.msra.mxu0 %v2387_v30  ;;  %564 = vmatpush1.bf16.msra.mxu1 %v2392_v31 }
  0x1c   :  { %524 = vmatprep.subr.bf16.mxu0 %v2399_v32  ;;  %565 = vmatprep.subr.bf16.mxu1 %v2406_v33 }
  0x1d   :  { %199 = vmatprep.mubr.bf16.mxu0 %v3138_v1  ;;  %272 = vmatprep.mubr.bf16.mxu1 %v3138_v1 }
  0x1f   :  { %525 = vmatpush1.bf16.msra.mxu0 %v2413_v34  ;;  %566 = vmatpush1.bf16.msra.mxu1 %v2418_v35 }
  0x20   :  { %526 = vmatprep.subr.bf16.mxu0 %v2425_v36  ;;  %567 = vmatprep.subr.bf16.mxu1 %v2432_v37 }
  0x22   :  { %1815 = vmatmul.mubr.msk.bf16.gmra.mxu0 %vm124_vm0, %v1984_v38  ;;  %1819 = vmatmul.mubr.msk.bf16.gmra.mxu1 %vm124_vm0, %v1984_v38 }
  0x23   :  { %527 = vmatpush1.bf16.msra.mxu0 %v2444_v39  ;;  %568 = vmatpush1.bf16.msra.mxu1 %v2449_v40 }
  0x24   :  { %528 = vmatprep.subr.bf16.mxu0 %v2456_v41  ;;  %569 = vmatprep.subr.bf16.mxu1 %v2461_v42 }
  0x25   :  { %546 = vmatprep.mubr.bf16.mxu0 %v3138_v1  ;;  %587 = vmatprep.mubr.bf16.mxu1 %v3138_v1 }
  0x27   :  { %529 = vmatpush1.bf16.msra.mxu0 %v2470_v43  ;;  %570 = vmatpush1.bf16.msra.mxu1 %v2475_v44 }
  0x28   :  { %632 = vmatprep.subr.bf16.mxu0 %v2269_v10  ;;  %673 = vmatprep.subr.bf16.mxu1 %v2274_v11 }
  0x2a   :  { %547 = vmatmul.mubr.bf16.vlgmr.msra.gmra.mxu0 %v3138_v1  ;;  %588 = vmatmul.mubr.bf16.vlgmr.msra.gmra.mxu1 %v3138_v1 }
  0x2b   :  { %633 = vmatpush1.bf16.msra.mxu0 %v2279_v12  ;;  %674 = vmatpush1.bf16.msra.mxu1 %v2284_v13 }
  0x2c   :  { %634 = vmatprep.subr.bf16.mxu0 %v2290_v14  ;;  %675 = vmatprep.subr.bf16.mxu1 %v2296_v15 }
  0x2d   :  { %664 = vmatprep.mubr.bf16.mxu0 %v3138_v1  ;;  %705 = vmatprep.mubr.bf16.mxu1 %v3138_v1 }
  0x2f   :  { %635 = vmatpush1.bf16.msra.mxu0 %v2303_v16  ;;  %676 = vmatpush1.bf16.msra.mxu1 %v2310_v17 }
  0x30   :  { %636 = vmatprep.subr.bf16.mxu0 %v2317_v18  ;;  %677 = vmatprep.subr.bf16.mxu1 %v2327_v20 }
  0x33   :  { %637 = vmatpush1.bf16.msra.mxu0 %v2332_v21  ;;  %678 = vmatpush1.bf16.msra.mxu1 %v2339_v22 }
  0x34   :  { %638 = vmatprep.subr.bf16.mxu0 %v2346_v23  ;;  %679 = vmatprep.subr.bf16.mxu1 %v2351_v24 }
  0x37   :  { %639 = vmatpush1.bf16.msra.mxu0 %v2358_v25  ;;  %680 = vmatpush1.bf16.msra.mxu1 %v2365_v26 }
  0x38   :  { %640 = vmatprep.subr.bf16.mxu0 %v2372_v27  ;;  %681 = vmatprep.subr.bf16.mxu1 %v2377_v28 }
  0x3b   :  { %641 = vmatpush1.bf16.msra.mxu0 %v2387_v30  ;;  %682 = vmatpush1.bf16.msra.mxu1 %v2392_v31 }
  0x3c   :  { %642 = vmatprep.subr.bf16.mxu0 %v2399_v32  ;;  %683 = vmatprep.subr.bf16.mxu1 %v2406_v33 }
  0x3f   :  { %643 = vmatpush1.bf16.msra.mxu0 %v2413_v34  ;;  %684 = vmatpush1.bf16.msra.mxu1 %v2418_v35 }
  0x40   :  { %644 = vmatprep.subr.bf16.mxu0 %v2425_v36  ;;  %685 = vmatprep.subr.bf16.mxu1 %v2432_v37 }
  0x43   :  { %645 = vmatpush1.bf16.msra.mxu0 %v2444_v39  ;;  %686 = vmatpush1.bf16.msra.mxu1 %v2449_v40 }
  0x44   :  { %646 = vmatprep.subr.bf16.mxu0 %v2456_v41  ;;  %687 = vmatprep.subr.bf16.mxu1 %v2461_v42 }
  0x47   :  { %647 = vmatpush1.bf16.msra.mxu0 %v2470_v43  ;;  %688 = vmatpush1.bf16.msra.mxu1 %v2475_v44 }
  0x48   :  { %750 = vmatprep.subr.bf16.mxu0 %v2269_v10  ;;  %791 = vmatprep.subr.bf16.mxu1 %v2274_v11 }
  0xca   :  { %v2529_v51 = vpop.f32.mrf.mxu0  ;;  %v2531_v52 = vpop.f32.mrf.mxu1 }
  0xcc   :  { %v2536_v55 = vpop.f32.mrf.mxu0  ;;  %v2538_v56 = vpop.f32.mrf.mxu1 }
  0xce   :  { %v175_v59 = vpop.f32.mrf.mxu0  ;;  %v248_v60 = vpop.f32.mrf.mxu1 }
  0xcf   :  { %v2546_v62 = vadd.f32 %v175_v59, %v47_v57  ;;  %v2549_v63 = vadd.f32 %v248_v60, %v2533_v53 }
  0xd0   :  { %v177_v0 = vpop.f32.mrf.mxu0  ;;  %v250_v2 = vpop.f32.mrf.mxu1 }
  0xd1   :  { %v2551_v3 = vadd.f32 %v177_v0, %v51_v61  ;;  %v2554_v4 = vadd.f32 %v250_v2, %v2542_v58 }
  0xd2   :  { %v181_v5 = vpop.f32.mrf.mxu0  ;;  %v254_v6 = vpop.f32.mrf.mxu1 }
  0xd3   :  { %v2556_v7 = vadd.f32 %v181_v5, %v47_v57  ;;  %v2559_v8 = vadd.f32 %v254_v6, %v2533_v53 }
  0xd4   :  { %v183_v9 = vpop.f32.mrf.mxu0  ;;  %v256_v19 = vpop.f32.mrf.mxu1 }
  0xd5   :  { %v2561_v29 = vadd.f32 %v183_v9, %v51_v61  ;;  %v2564_v38 = vadd.f32 %v256_v19, %v2542_v58 }
  0xd6   :  { %v185_v45 = vpop.f32.mrf.mxu0  ;;  %v258_v47 = vpop.f32.mrf.mxu1 }
  0xd7   :  { %3143 = vst [vmem:[#allocation4_spill] sm:$0xff] %v2564_v38  ;;  %v2566_v49 = vadd.f32 %v185_v45, %v47_v57  ;;  %v2569_v50 = vadd.f32 %v258_v47, %v2533_v53 }
  0xd8   :  { %v187_v59 = vpop.f32.mrf.mxu0  ;;  %v260_v60 = vpop.f32.mrf.mxu1 }
  0xd9   :  { %3144 = vst [vmem:[#allocation5_spill] sm:$0xff] %v2566_v49  ;;  %3145 = vst [vmem:[#allocation6_spill] sm:$0xff] %v2569_v50  ;;  %v2571_v0 = vadd.f32 %v187_v59, %v51_v61  ;;  %v2574_v2 = vadd.f32 %v260_v60, %v2542_v58 }
  0xda   :  { %v191_v5 = vpop.f32.mrf.mxu0  ;;  %v264_v6 = vpop.f32.mrf.mxu1 }
  0xdb   :  { %3146 = vst [vmem:[#allocation7_spill] sm:$0xff] %v2571_v0  ;;  %3147 = vst [vmem:[#allocation8_spill] sm:$0xff] %v2574_v2  ;;  %v2576_v9 = vadd.f32 %v191_v5, %v47_v57  ;;  %v2579_v19 = vadd.f32 %v264_v6, %v2533_v53 }
  0xdc   :  { %v193_v54 = vpop.f32.mrf.mxu0  ;;  %v266_v45 = vpop.f32.mrf.mxu1 }
  0xdd   :  { %3148 = vst [vmem:[#allocation9_spill] sm:$0xff] %v2576_v9  ;;  %3149 = vst [vmem:[#allocation10_spill] sm:$0xff] %v2579_v19  ;;  %v2581_v48 = vadd.f32 %v193_v54, %v51_v61  ;;  %v2584_v47 = vadd.f32 %v266_v45, %v2542_v58 }
  0xde   :  { %v195_v1 = vpop.f32.mrf.mxu0  ;;  %v268_v59 = vpop.f32.mrf.mxu1 }
  0xdf   :  { %3150 = vst [vmem:[#allocation11_spill] sm:$0xff] %v2581_v48  ;;  %3151 = vst [vmem:[#allocation12_spill] sm:$0xff] %v2584_v47  ;;  %v2586_v46 = vadd.f32 %v195_v1, %v47_v57  ;;  %v2589_v60 = vadd.f32 %v268_v59, %v2533_v53 }
  0xe0   :  { %v197_v2 = vpop.f32.mrf.mxu0  ;;  %v270_v5 = vpop.f32.mrf.mxu1 }
  0xe1   :  { %3152 = vst [vmem:[#allocation13_spill] sm:$0xff] %v2586_v46  ;;  %3153 = vst [vmem:[#allocation14_spill] sm:$0xff] %v2589_v60  ;;  %v2591_v9 = vadd.f32 %v197_v2, %v51_v61  ;;  %v2594_v6 = vadd.f32 %v270_v5, %v2542_v58 }
  0xe2   :  { %v201_v19 = vpop.f32.mrf.mxu0  ;;  %v274_v54 = vpop.f32.mrf.mxu1 }
  0xe3   :  { %3154 = vst [vmem:[#allocation15_spill] sm:$0xff] %v2591_v9  ;;  %3155 = vst [vmem:[#allocation16_spill] sm:$0xff] %v2594_v6  ;;  %v2596_v48 = vadd.f32 %v201_v19, %v47_v57  ;;  %v2599_v45 = vadd.f32 %v274_v54, %v2533_v53 }
  0xe4   :  { %v203_v47 = vpop.f32.mrf.mxu0  ;;  %v276_v1 = vpop.f32.mrf.mxu1 }
  0xe5   :  { %3156 = vst [vmem:[#allocation17_spill] sm:$0xff] %v2596_v48  ;;  %3157 = vst [vmem:[#allocation18_spill] sm:$0xff] %v2599_v45  ;;  %v2601_v46 = vadd.f32 %v203_v47, %v51_v61  ;;  %v2604_v59 = vadd.f32 %v276_v1, %v2542_v58  ;;  %v172_v48 = vadd.f32 %v2529_v51, %v47_v57 }
  0xe6   :  { %v205_v60 = vpop.f32.mrf.mxu0  ;;  %v278_v2 = vpop.f32.mrf.mxu1  ;;  %v174_v1 = vadd.f32 %v2536_v55, %v51_v61 }
  0xe7   :  { %3158 = vst [vmem:[#allocation19_spill] sm:$0xff] %v2601_v46  ;;  %3159 = vst [vmem:[#allocation20_spill] sm:$0xff] %v2604_v59  ;;  %v2606_v9 = vadd.f32 %v205_v60, %v47_v57  ;;  %v2609_v5 = vadd.f32 %v278_v2, %v2533_v53  ;;  %v245_v57 = vadd.f32 %v2531_v52, %v2533_v53 }
  0xe8   :  { %v207_v6 = vpop.f32.mrf.mxu0  ;;  %v280_v19 = vpop.f32.mrf.mxu1 }
  0xe9   :  { %3160 = vst [vmem:[#allocation21_spill] sm:$0xff] %v2606_v9  ;;  %3161 = vst [vmem:[#allocation22_spill] sm:$0xff] %v2609_v5  ;;  %v2612_v54 = vadd.f32 %v207_v6, %v51_v61  ;;  %v2615_v45 = vadd.f32 %v280_v19, %v2542_v58  ;;  %v247_v19 = vadd.f32 %v2538_v56, %v2542_v58 }
  0xea   :  { %v548_v47 = vpop.f32.mrf.mxu0  ;;  %v589_v46 = vpop.f32.mrf.mxu1 }
  0xeb   :  { %v596_v59 = vadd.f32 %v548_v47, %v172_v48  ;;  %v598_v6 = vadd.f32 %v589_v46, %v245_v57 }
  0xec   :  { %v550_v50 = vpop.f32.mrf.mxu0  ;;  %v591_v60 = vpop.f32.mrf.mxu1 }
  0xed   :  { %v1852_v9 = vmul.f32 -1.442695, %v596_v59  ;;  %v597_v0 = vadd.f32 %v550_v50, %v174_v1  ;;  %v1854_v55 = vmul.f32 -1.442695, %v598_v6  ;;  %v599_v61 = vadd.f32 %v591_v60, %v247_v19 }
  0xee   :  { %v552_v2 = vpop.f32.mrf.mxu0  ;;  %v593_v5 = vpop.f32.mrf.mxu1 }
  0xef   :  { %2037 = vpow2.f32 %v1852_v9  ;;  %v1853_v49 = vmul.f32 -1.442695, %v597_v0  ;;  %v3162_v2 = vmov 0  }
  0xf0   :  { %v553_v38 = vpop.f32.mrf.mxu0  ;;  %v594_v51 = vpop.f32.mrf.mxu1 }
  0xf1   :  { %2039 = vpow2.f32 %v1853_v49 }
  0xf2   :  { %2041 = vpow2.f32 %v1854_v55 }
  0xfc   :  { %v2038_v48 = vpop.eup %2037 }
  0xfd   :  { %v609_v47 = vadd.f32 1.0, %v2038_v48 }
  0xfe   :  { %v2040_v59 = vpop.eup %2039 }
  0xff   :  { %2043 = vrcp.f32 %v609_v47  ;;  %v610_v50 = vadd.f32 1.0, %v2040_v59  ;;  %v2042_v38 = vpop.eup %2041 }
 0x100   :  { %2045 = vtanh.f32 %v599_v61  ;;  %v611_v5 = vadd.f32 1.0, %v2042_v38 }
 0x101   :  { %2047 = vrcp.f32 %v610_v50 }
 0x102   :  { %2049 = vrcp.f32 %v611_v5 }
 0x10c   :  { %v2044_v0 = vpop.eup %2043 }
 0x10d   :  { %v2046_v49 = vpop.eup %2045 }
 0x10e   :  { %v2048_v9 = vpop.eup %2047  ;;  %v620_v46 = vmul.f32 %v2046_v49, %v2044_v0 }
 0x10f   :  { %v619_v52 = vmul.f32 0.0, %v2048_v9  ;;  %v2050_v56 = vpop.eup %2049 }
 0x111   :  { %v2622_v53 = vadd.f32 %v620_v46, %v619_v52 }
 0x113   :  { %2051 = vtanh.f32 %v2622_v53 }
 0x120   :  { %v2052_v58 = vpop.eup %2051 }
 0x121   :  { %v623_v1 = vmul.f32 %v2052_v58, %v2050_v56 }
 0x123   :  { %v631_v60 = vpack.c.bf16 %v623_v1, %v623_v1 }
 0x125   :  { %665 = vmatmul.mubr.bf16.vlgmr.msra.gmra.mxu0 %v631_v60  ;;  %706 = vmatmul.mubr.bf16.vlgmr.msra.gmra.mxu1 %v631_v60 }
 0x126   :  { %751 = vmatpush1.bf16.msra.mxu0 %v2279_v12  ;;  %792 = vmatpush1.bf16.msra.mxu1 %v2284_v13 }
 0x127   :  { %752 = vmatprep.subr.bf16.mxu0 %v2290_v14  ;;  %793 = vmatprep.subr.bf16.mxu1 %v2296_v15 }
 0x128   :  { %782 = vmatprep.mubr.bf16.mxu0 %v3162_v2  ;;  %823 = vmatprep.mubr.bf16.mxu1 %v3162_v2 }
 0x12a   :  { %753 = vmatpush1.bf16.msra.mxu0 %v2303_v16  ;;  %794 = vmatpush1.bf16.msra.mxu1 %v2310_v17 }
 0x12b   :  { %754 = vmatprep.subr.bf16.mxu0 %v2317_v18  ;;  %795 = vmatprep.subr.bf16.mxu1 %v2327_v20 }
 0x12e   :  { %755 = vmatpush1.bf16.msra.mxu0 %v2332_v21  ;;  %796 = vmatpush1.bf16.msra.mxu1 %v2339_v22 }
 0x12f   :  { %756 = vmatprep.subr.bf16.mxu0 %v2346_v23  ;;  %797 = vmatprep.subr.bf16.mxu1 %v2351_v24 }
 0x132   :  { %757 = vmatpush1.bf16.msra.mxu0 %v2358_v25  ;;  %798 = vmatpush1.bf16.msra.mxu1 %v2365_v26 }
 0x133   :  { %758 = vmatprep.subr.bf16.mxu0 %v2372_v27  ;;  %799 = vmatprep.subr.bf16.mxu1 %v2377_v28 }
 0x136   :  { %759 = vmatpush1.bf16.msra.mxu0 %v2387_v30  ;;  %800 = vmatpush1.bf16.msra.mxu1 %v2392_v31 }
 0x137   :  { %760 = vmatprep.subr.bf16.mxu0 %v2399_v32  ;;  %801 = vmatprep.subr.bf16.mxu1 %v2406_v33 }
 0x13a   :  { %761 = vmatpush1.bf16.msra.mxu0 %v2413_v34  ;;  %802 = vmatpush1.bf16.msra.mxu1 %v2418_v35 }
 0x13b   :  { %762 = vmatprep.subr.bf16.mxu0 %v2425_v36  ;;  %803 = vmatprep.subr.bf16.mxu1 %v2432_v37 }
 0x13e   :  { %763 = vmatpush1.bf16.msra.mxu0 %v2444_v39  ;;  %804 = vmatpush1.bf16.msra.mxu1 %v2449_v40 }
 0x13f   :  { %764 = vmatprep.subr.bf16.mxu0 %v2456_v41  ;;  %805 = vmatprep.subr.bf16.mxu1 %v2461_v42 }
 0x142   :  { %765 = vmatpush1.bf16.msra.mxu0 %v2470_v43  ;;  %806 = vmatpush1.bf16.msra.mxu1 %v2475_v44 }
 0x143   :  { %868 = vmatprep.subr.bf16.mxu0 %v2269_v10  ;;  %909 = vmatprep.subr.bf16.mxu1 %v2274_v11 }
 0x1e5   :  { %v666_v51 = vpop.f32.mrf.mxu0  ;;  %v707_v57 = vpop.f32.mrf.mxu1 }
 0x1e6   :  { %v714_v6 = vadd.f32 %v666_v51, %v2546_v62  ;;  %v716_v49 = vadd.f32 %v707_v57, %v2549_v63 }
 0x1e7   :  { %v668_v19 = vpop.f32.mrf.mxu0  ;;  %v709_v55 = vpop.f32.mrf.mxu1 }
 0x1e8   :  { %v1855_v48 = vmul.f32 -1.442695, %v714_v6  ;;  %v715_v61 = vadd.f32 %v668_v19, %v2551_v3  ;;  %v1857_v9 = vmul.f32 -1.442695, %v716_v49  ;;  %v717_v5 = vadd.f32 %v709_v55, %v2554_v4 }
 0x1e9   :  { %v670_v47 = vpop.f32.mrf.mxu0  ;;  %v711_v59 = vpop.f32.mrf.mxu1 }
 0x1ea   :  { %2053 = vpow2.f32 %v1855_v48  ;;  %v1856_v50 = vmul.f32 -1.442695, %v715_v61 }
 0x1eb   :  { %v671_v38 = vpop.f32.mrf.mxu0  ;;  %v712_v0 = vpop.f32.mrf.mxu1 }
 0x1ec   :  { %2055 = vpow2.f32 %v1856_v50 }
 0x1ed   :  { %2057 = vpow2.f32 %v1857_v9 }
 0x1ee   :  { %2059 = vtanh.f32 %v717_v5 }
 0x1f7   :  { %v2054_v52 = vpop.eup %2053 }
 0x1f8   :  { %v727_v46 = vadd.f32 1.0, %v2054_v52 }
 0x1f9   :  { %v2056_v62 = vpop.eup %2055 }
 0x1fa   :  { %2061 = vrcp.f32 %v727_v46  ;;  %v728_v56 = vadd.f32 1.0, %v2056_v62  ;;  %v2058_v3 = vpop.eup %2057 }
 0x1fb   :  { %v2060_v58 = vpop.eup %2059  ;;  %v729_v6 = vadd.f32 1.0, %v2058_v3  ;;  %v3163_v3 = vld [vmem:[#allocation4_spill] sm:$0xff] }
 0x1fc   :  { %2063 = vrcp.f32 %v728_v56 }
 0x1fd   :  { %2065 = vrcp.f32 %v729_v6 }
 0x207   :  { %v2062_v1 = vpop.eup %2061 }
 0x208   :  { %v738_v60 = vmul.f32 %v2062_v1, %v2060_v58 }
 0x209   :  { %v2064_v51 = vpop.eup %2063 }
 0x20a   :  { %v737_v19 = vmul.f32 %v2064_v51, %v2622_v53  ;;  %v2066_v4 = vpop.eup %2065 }
 0x20c   :  { %v2664_v63 = vadd.f32 %v738_v60, %v737_v19 }
 0x20e   :  { %2067 = vtanh.f32 %v2664_v63 }
 0x21b   :  { %v2068_v57 = vpop.eup %2067 }
 0x21c   :  { %v741_v55 = vmul.f32 %v2068_v57, %v2066_v4 }
 0x21e   :  { %v749_v48 = vpack.c.bf16 %v741_v55, %v741_v55 }
 0x220   :  { %783 = vmatmul.mubr.bf16.vlgmr.msra.gmra.mxu0 %v749_v48  ;;  %824 = vmatmul.mubr.bf16.vlgmr.msra.gmra.mxu1 %v749_v48 }
 0x221   :  { %869 = vmatpush1.bf16.msra.mxu0 %v2279_v12  ;;  %910 = vmatpush1.bf16.msra.mxu1 %v2284_v13 }
 0x222   :  { %870 = vmatprep.subr.bf16.mxu0 %v2290_v14  ;;  %911 = vmatprep.subr.bf16.mxu1 %v2296_v15 }
 0x223   :  { %900 = vmatprep.mubr.bf16.mxu0 %v3162_v2  ;;  %941 = vmatprep.mubr.bf16.mxu1 %v3162_v2 }
 0x225   :  { %871 = vmatpush1.bf16.msra.mxu0 %v2303_v16  ;;  %912 = vmatpush1.bf16.msra.mxu1 %v2310_v17 }
 0x226   :  { %872 = vmatprep.subr.bf16.mxu0 %v2317_v18  ;;  %913 = vmatprep.subr.bf16.mxu1 %v2327_v20 }
 0x229   :  { %873 = vmatpush1.bf16.msra.mxu0 %v2332_v21  ;;  %914 = vmatpush1.bf16.msra.mxu1 %v2339_v22 }
 0x22a   :  { %874 = vmatprep.subr.bf16.mxu0 %v2346_v23  ;;  %915 = vmatprep.subr.bf16.mxu1 %v2351_v24 }
 0x22d   :  { %875 = vmatpush1.bf16.msra.mxu0 %v2358_v25  ;;  %916 = vmatpush1.bf16.msra.mxu1 %v2365_v26 }
 0x22e   :  { %876 = vmatprep.subr.bf16.mxu0 %v2372_v27  ;;  %917 = vmatprep.subr.bf16.mxu1 %v2377_v28 }
 0x231   :  { %877 = vmatpush1.bf16.msra.mxu0 %v2387_v30  ;;  %918 = vmatpush1.bf16.msra.mxu1 %v2392_v31 }
 0x232   :  { %878 = vmatprep.subr.bf16.mxu0 %v2399_v32  ;;  %919 = vmatprep.subr.bf16.mxu1 %v2406_v33 }
 0x235   :  { %879 = vmatpush1.bf16.msra.mxu0 %v2413_v34  ;;  %920 = vmatpush1.bf16.msra.mxu1 %v2418_v35 }
 0x236   :  { %880 = vmatprep.subr.bf16.mxu0 %v2425_v36  ;;  %921 = vmatprep.subr.bf16.mxu1 %v2432_v37 }
 0x239   :  { %881 = vmatpush1.bf16.msra.mxu0 %v2444_v39  ;;  %922 = vmatpush1.bf16.msra.mxu1 %v2449_v40 }
 0x23a   :  { %882 = vmatprep.subr.bf16.mxu0 %v2456_v41  ;;  %923 = vmatprep.subr.bf16.mxu1 %v2461_v42 }
 0x23d   :  { %883 = vmatpush1.bf16.msra.mxu0 %v2470_v43  ;;  %924 = vmatpush1.bf16.msra.mxu1 %v2475_v44 }
 0x23e   :  { %986 = vmatprep.subr.bf16.mxu0 %v2269_v10  ;;  %1027 = vmatprep.subr.bf16.mxu1 %v2274_v11 }
 0x2e0   :  { %v784_v53 = vpop.f32.mrf.mxu0  ;;  %v825_v61 = vpop.f32.mrf.mxu1 }
 0x2e1   :  { %v832_v47 = vadd.f32 %v784_v53, %v2556_v7  ;;  %v834_v62 = vadd.f32 %v825_v61, %v2559_v8 }
 0x2e2   :  { %v786_v59 = vpop.f32.mrf.mxu0  ;;  %v827_v50 = vpop.f32.mrf.mxu1 }
 0x2e3   :  { %v1858_v38 = vmul.f32 -1.442695, %v832_v47  ;;  %v833_v0 = vadd.f32 %v786_v59, %v2561_v29  ;;  %v1860_v56 = vmul.f32 -1.442695, %v834_v62  ;;  %v835_v58 = vadd.f32 %v827_v50, %v3163_v3 }
 0x2e4   :  { %v788_v49 = vpop.f32.mrf.mxu0  ;;  %v829_v9 = vpop.f32.mrf.mxu1 }
 0x2e5   :  { %2069 = vpow2.f32 %v1858_v38  ;;  %v1859_v5 = vmul.f32 -1.442695, %v833_v0  ;;  %v3164_v38 = vld [vmem:[#allocation5_spill] sm:$0xff] }
 0x2e6   :  { %v789_v52 = vpop.f32.mrf.mxu0  ;;  %v830_v46 = vpop.f32.mrf.mxu1 }
 0x2e7   :  { %2071 = vpow2.f32 %v1859_v5  ;;  %v3165_v52 = vld [vmem:[#allocation7_spill] sm:$0xff] }
 0x2e8   :  { %2073 = vpow2.f32 %v1860_v56 }
 0x2e9   :  { %2075 = vtanh.f32 %v835_v58 }
 0x2f2   :  { %v2070_v1 = vpop.eup %2069 }
 0x2f3   :  { %v845_v60 = vadd.f32 1.0, %v2070_v1 }
 0x2f4   :  { %v2072_v7 = vpop.eup %2071 }
 0x2f5   :  { %2077 = vrcp.f32 %v845_v60  ;;  %v846_v51 = vadd.f32 1.0, %v2072_v7  ;;  %v2074_v29 = vpop.eup %2073  ;;  %v3166_v60 = vld [vmem:[#allocation6_spill] sm:$0xff] }
 0x2f6   :  { %v2076_v6 = vpop.eup %2075  ;;  %v847_v55 = vadd.f32 1.0, %v2074_v29 }
 0x2f7   :  { %2079 = vrcp.f32 %v846_v51 }
 0x2f8   :  { %2081 = vrcp.f32 %v847_v55 }
 0x302   :  { %v2078_v19 = vpop.eup %2077 }
 0x303   :  { %v856_v4 = vmul.f32 %v2078_v19, %v2076_v6 }
 0x304   :  { %v2080_v57 = vpop.eup %2079 }
 0x305   :  { %v855_v48 = vmul.f32 %v2080_v57, %v2664_v63  ;;  %v2082_v53 = vpop.eup %2081 }
 0x307   :  { %v2706_v8 = vadd.f32 %v856_v4, %v855_v48 }
 0x309   :  { %2083 = vtanh.f32 %v2706_v8 }
 0x316   :  { %v2084_v61 = vpop.eup %2083 }
 0x317   :  { %v859_v47 = vmul.f32 %v2084_v61, %v2082_v53 }
 0x319   :  { %v867_v59 = vpack.c.bf16 %v859_v47, %v859_v47 }
 0x31b   :  { %901 = vmatmul.mubr.bf16.vlgmr.msra.gmra.mxu0 %v867_v59  ;;  %942 = vmatmul.mubr.bf16.vlgmr.msra.gmra.mxu1 %v867_v59 }
 0x31c   :  { %987 = vmatpush1.bf16.msra.mxu0 %v2279_v12  ;;  %1028 = vmatpush1.bf16.msra.mxu1 %v2284_v13 }
 0x31d   :  { %988 = vmatprep.subr.bf16.mxu0 %v2290_v14  ;;  %1029 = vmatprep.subr.bf16.mxu1 %v2296_v15 }
 0x31e   :  { %1018 = vmatprep.mubr.bf16.mxu0 %v3162_v2  ;;  %1059 = vmatprep.mubr.bf16.mxu1 %v3162_v2 }
 0x320   :  { %989 = vmatpush1.bf16.msra.mxu0 %v2303_v16  ;;  %1030 = vmatpush1.bf16.msra.mxu1 %v2310_v17 }
 0x321   :  { %990 = vmatprep.subr.bf16.mxu0 %v2317_v18  ;;  %1031 = vmatprep.subr.bf16.mxu1 %v2327_v20 }
 0x324   :  { %991 = vmatpush1.bf16.msra.mxu0 %v2332_v21  ;;  %1032 = vmatpush1.bf16.msra.mxu1 %v2339_v22 }
 0x325   :  { %992 = vmatprep.subr.bf16.mxu0 %v2346_v23  ;;  %1033 = vmatprep.subr.bf16.mxu1 %v2351_v24 }
 0x328   :  { %993 = vmatpush1.bf16.msra.mxu0 %v2358_v25  ;;  %1034 = vmatpush1.bf16.msra.mxu1 %v2365_v26 }
 0x329   :  { %994 = vmatprep.subr.bf16.mxu0 %v2372_v27  ;;  %1035 = vmatprep.subr.bf16.mxu1 %v2377_v28 }
 0x32c   :  { %995 = vmatpush1.bf16.msra.mxu0 %v2387_v30  ;;  %1036 = vmatpush1.bf16.msra.mxu1 %v2392_v31 }
 0x32d   :  { %996 = vmatprep.subr.bf16.mxu0 %v2399_v32  ;;  %1037 = vmatprep.subr.bf16.mxu1 %v2406_v33 }
 0x330   :  { %997 = vmatpush1.bf16.msra.mxu0 %v2413_v34  ;;  %1038 = vmatpush1.bf16.msra.mxu1 %v2418_v35 }
 0x331   :  { %998 = vmatprep.subr.bf16.mxu0 %v2425_v36  ;;  %1039 = vmatprep.subr.bf16.mxu1 %v2432_v37 }
 0x334   :  { %999 = vmatpush1.bf16.msra.mxu0 %v2444_v39  ;;  %1040 = vmatpush1.bf16.msra.mxu1 %v2449_v40 }
 0x335   :  { %1000 = vmatprep.subr.bf16.mxu0 %v2456_v41  ;;  %1041 = vmatprep.subr.bf16.mxu1 %v2461_v42 }
 0x338   :  { %1001 = vmatpush1.bf16.msra.mxu0 %v2470_v43  ;;  %1042 = vmatpush1.bf16.msra.mxu1 %v2475_v44 }
 0x339   :  { %1104 = vmatprep.subr.bf16.mxu0 %v2269_v10  ;;  %1145 = vmatprep.subr.bf16.mxu1 %v2274_v11  ;;  %v3167_v11 = vld [vmem:[#allocation8_spill] sm:$0xff] }
 0x3db   :  { %v902_v63 = vpop.f32.mrf.mxu0  ;;  %v943_v50 = vpop.f32.mrf.mxu1 }
 0x3dc   :  { %v950_v0 = vadd.f32 %v902_v63, %v3164_v38  ;;  %v952_v10 = vadd.f32 %v943_v50, %v3166_v60 }
 0x3dd   :  { %v904_v49 = vpop.f32.mrf.mxu0  ;;  %v945_v9 = vpop.f32.mrf.mxu1 }
 0x3de   :  { %v1861_v5 = vmul.f32 -1.442695, %v950_v0  ;;  %v951_v46 = vadd.f32 %v904_v49, %v3165_v52  ;;  %v1863_v7 = vmul.f32 -1.442695, %v952_v10  ;;  %v953_v51 = vadd.f32 %v945_v9, %v3167_v11 }
 0x3df   :  { %v906_v62 = vpop.f32.mrf.mxu0  ;;  %v947_v56 = vpop.f32.mrf.mxu1 }
 0x3e0   :  { %2085 = vpow2.f32 %v1861_v5  ;;  %v1862_v3 = vmul.f32 -1.442695, %v951_v46 }
 0x3e1   :  { %v907_v58 = vpop.f32.mrf.mxu0  ;;  %v948_v1 = vpop.f32.mrf.mxu1 }
 0x3e2   :  { %2087 = vpow2.f32 %v1862_v3 }
 0x3e3   :  { %2089 = vpow2.f32 %v1863_v7 }
 0x3e4   :  { %2091 = vtanh.f32 %v953_v51 }
 0x3ed   :  { %v2086_v29 = vpop.eup %2085 }
 0x3ee   :  { %v963_v6 = vadd.f32 1.0, %v2086_v29  ;;  %v2806_v29 = vld [vmem:[%s3131_s2 + $0xe0] ss:$16 sps:$4 sm:$0xff]  }
 0x3ef   :  { %v2088_v19 = vpop.eup %2087 }
 0x3f0   :  { %2093 = vrcp.f32 %v963_v6  ;;  %v964_v4 = vadd.f32 1.0, %v2088_v19  ;;  %v2090_v57 = vpop.eup %2089  ;;  %v2812_v6 = vld [vmem:[%s3131_s2 + $0xe8] ss:$16 sps:$4 sm:$0xff]   ;;  %v2818_v19 = vld [vmem:[%s3131_s2 + $0xc4] ss:$16 sps:$4 sm:$0xff]  }
 0x3f1   :  { %v2092_v55 = vpop.eup %2091  ;;  %v965_v47 = vadd.f32 1.0, %v2090_v57  ;;  %v2832_v57 = vld [vmem:[%s3131_s2 + $0xc0] ss:$16 sps:$4 sm:$0xff]  }
 0x3f2   :  { %2095 = vrcp.f32 %v964_v4  ;;  %v2824_v4 = vld [vmem:[%s3131_s2 + $0xcc] ss:$16 sps:$4 sm:$0xff]  }
 0x3f3   :  { %2097 = vrcp.f32 %v965_v47  ;;  %v2862_v47 = vld [vmem:[%s3131_s2 + $0xa8] ss:$16 sps:$4 sm:$0xff]  }
 0x3fd   :  { %v2094_v48 = vpop.eup %2093 }
 0x3fe   :  { %v974_v53 = vmul.f32 %v2094_v48, %v2092_v55  ;;  %v2838_v55 = vld [vmem:[%s3131_s2 + $0xc8] ss:$16 sps:$4 sm:$0xff]   ;;  %v2844_v48 = vld [vmem:[%s3131_s2 + $0xa4] ss:$16 sps:$4 sm:$0xff]  }
 0x3ff   :  { %v2096_v61 = vpop.eup %2095 }
 0x400   :  { %v973_v59 = vmul.f32 %v2096_v61, %v2706_v8  ;;  %v2098_v50 = vpop.eup %2097  ;;  %v2856_v61 = vld [vmem:[%s3131_s2 + $0xa0] ss:$16 sps:$4 sm:$0xff]  }
 0x402   :  { %v2748_v63 = vadd.f32 %v974_v53, %v973_v59  ;;  %v2850_v53 = vld [vmem:[%s3131_s2 + $0xac] ss:$16 sps:$4 sm:$0xff]   ;;  %v2868_v59 = vld [vmem:[%s3131_s2 + $0x84] ss:$16 sps:$4 sm:$0xff]  }
 0x404   :  { %2099 = vtanh.f32 %v2748_v63 }
 0x411   :  { %v2100_v38 = vpop.eup %2099 }
 0x412   :  { %v977_v0 = vmul.f32 %v2100_v38, %v2098_v50  ;;  %v2880_v50 = vld [vmem:[%s3131_s2 + $0x80] ss:$16 sps:$4 sm:$0xff]   ;;  %v2886_v38 = vld [vmem:[%s3131_s2 + $0x88] ss:$16 sps:$4 sm:$0xff]  }
 0x414   :  { %v985_v49 = vpack.c.bf16 %v977_v0, %v977_v0  ;;  %v2892_v0 = vld [vmem:[%s3131_s2 + $0x64] ss:$16 sps:$4 sm:$0xff]  }
 0x416   :  { %1019 = vmatmul.mubr.bf16.vlgmr.msra.gmra.mxu0 %v985_v49  ;;  %1060 = vmatmul.mubr.bf16.vlgmr.msra.gmra.mxu1 %v985_v49  ;;  %v2898_v49 = vld [vmem:[%s3131_s2 + $0x6c] ss:$16 sps:$4 sm:$0xff]  }
 0x417   :  { %1105 = vmatpush1.bf16.msra.mxu0 %v2279_v12  ;;  %1146 = vmatpush1.bf16.msra.mxu1 %v2284_v13  ;;  %v2786_v12 = vld [vmem:[%s3131_s2 + $0xe4] ss:$16 sps:$4 sm:$0xff]   ;;  %v2792_v13 = vld [vmem:[%s3131_s2 + $0xec] ss:$16 sps:$4 sm:$0xff]  }
 0x418   :  { %1106 = vmatprep.subr.bf16.mxu0 %v2290_v14  ;;  %1147 = vmatprep.subr.bf16.mxu1 %v2296_v15 }
 0x419   :  { %1136 = vmatprep.mubr.bf16.mxu0 %v3162_v2  ;;  %1177 = vmatprep.mubr.bf16.mxu1 %v3162_v2 }
 0x41b   :  { %1107 = vmatpush1.bf16.msra.mxu0 %v2303_v16  ;;  %1148 = vmatpush1.bf16.msra.mxu1 %v2310_v17  ;;  %v3168_v16 = vld [vmem:[#allocation9_spill] sm:$0xff] }
 0x41c   :  { %1108 = vmatprep.subr.bf16.mxu0 %v2317_v18  ;;  %1149 = vmatprep.subr.bf16.mxu1 %v2327_v20 }
 0x41f   :  { %1109 = vmatpush1.bf16.msra.mxu0 %v2332_v21  ;;  %1150 = vmatpush1.bf16.msra.mxu1 %v2339_v22  ;;  %v3169_v22 = vld [vmem:[#allocation11_spill] sm:$0xff] }
 0x420   :  { %1110 = vmatprep.subr.bf16.mxu0 %v2346_v23  ;;  %1151 = vmatprep.subr.bf16.mxu1 %v2351_v24 }
 0x423   :  { %1111 = vmatpush1.bf16.msra.mxu0 %v2358_v25  ;;  %1152 = vmatpush1.bf16.msra.mxu1 %v2365_v26 }
 0x424   :  { %1112 = vmatprep.subr.bf16.mxu0 %v2372_v27  ;;  %1153 = vmatprep.subr.bf16.mxu1 %v2377_v28 }
 0x427   :  { %1113 = vmatpush1.bf16.msra.mxu0 %v2387_v30  ;;  %1154 = vmatpush1.bf16.msra.mxu1 %v2392_v31  ;;  %v3170_v30 = vld [vmem:[#allocation10_spill] sm:$0xff] }
 0x428   :  { %1114 = vmatprep.subr.bf16.mxu0 %v2399_v32  ;;  %1155 = vmatprep.subr.bf16.mxu1 %v2406_v33  ;;  %v3171_v33 = vld [vmem:[#allocation12_spill] sm:$0xff] }
 0x42b   :  { %1115 = vmatpush1.bf16.msra.mxu0 %v2413_v34  ;;  %1156 = vmatpush1.bf16.msra.mxu1 %v2418_v35 }
 0x42c   :  { %1116 = vmatprep.subr.bf16.mxu0 %v2425_v36  ;;  %1157 = vmatprep.subr.bf16.mxu1 %v2432_v37 }
 0x42f   :  { %1117 = vmatpush1.bf16.msra.mxu0 %v2444_v39  ;;  %1158 = vmatpush1.bf16.msra.mxu1 %v2449_v40 }
 0x430   :  { %1118 = vmatprep.subr.bf16.mxu0 %v2456_v41  ;;  %1159 = vmatprep.subr.bf16.mxu1 %v2461_v42 }
 0x433   :  { %1119 = vmatpush1.bf16.msra.mxu0 %v2470_v43  ;;  %1160 = vmatpush1.bf16.msra.mxu1 %v2475_v44 }
 0x434   :  { %1222 = vmatprep.subr.bf16.mxu0 %v2786_v12  ;;  %1263 = vmatprep.subr.bf16.mxu1 %v2792_v13 }
 0x4d6   :  { %v1020_v14 = vpop.f32.mrf.mxu0  ;;  %v1061_v15 = vpop.f32.mrf.mxu1 }
 0x4d7   :  { %v1068_v17 = vadd.f32 %v1020_v14, %v3168_v16  ;;  %v1070_v31 = vadd.f32 %v1061_v15, %v3170_v30  ;;  %v2904_v14 = vld [vmem:[%s3131_s2 + $0x60] ss:$16 sps:$4 sm:$0xff]   ;;  %v2910_v15 = vld [vmem:[%s3131_s2 + $0x68] ss:$16 sps:$4 sm:$0xff]   ;;  %v2916_v16 = vld [vmem:[%s3131_s2 + $0x44] ss:$16 sps:$4 sm:$0xff]  }
 0x4d8   :  { %v1022_v18 = vpop.f32.mrf.mxu0  ;;  %v1063_v20 = vpop.f32.mrf.mxu1 }
 0x4d9   :  { %v1864_v21 = vmul.f32 -1.442695, %v1068_v17  ;;  %v1069_v23 = vadd.f32 %v1022_v18, %v3169_v22  ;;  %v1866_v32 = vmul.f32 -1.442695, %v1070_v31  ;;  %v1071_v34 = vadd.f32 %v1063_v20, %v3171_v33  ;;  %v2922_v17 = vld [vmem:[%s3131_s2 + $0x4c] ss:$16 sps:$4 sm:$0xff]  }
 0x4da   :  { %v1024_v24 = vpop.f32.mrf.mxu0  ;;  %v1065_v25 = vpop.f32.mrf.mxu1  ;;  %v2928_v18 = vld [vmem:[%s3131_s2 + $0x40] ss:$16 sps:$4 sm:$0xff]   ;;  %v2934_v20 = vld [vmem:[%s3131_s2 + $0x48] ss:$16 sps:$4 sm:$0xff]  }
 0x4db   :  { %2101 = vpow2.f32 %v1864_v21  ;;  %v1865_v26 = vmul.f32 -1.442695, %v1069_v23  ;;  %v3172_v22 = vld [vmem:[#allocation13_spill] sm:$0xff] }
 0x4dc   :  { %v1025_v27 = vpop.f32.mrf.mxu0  ;;  %v1066_v28 = vpop.f32.mrf.mxu1 }
 0x4dd   :  { %2103 = vpow2.f32 %v1865_v26 }
 0x4de   :  { %2105 = vpow2.f32 %v1866_v32 }
 0x4df   :  { %2107 = vtanh.f32 %v1071_v34 }
 0x4e8   :  { %v2102_v35 = vpop.eup %2101 }
 0x4e9   :  { %v1081_v8 = vadd.f32 1.0, %v2102_v35 }
 0x4ea   :  { %v2104_v9 = vpop.eup %2103 }
 0x4eb   :  { %2109 = vrcp.f32 %v1081_v8  ;;  %v1082_v5 = vadd.f32 1.0, %v2104_v9  ;;  %v2106_v52 = vpop.eup %2105 }
 0x4ec   :  { %v2108_v46 = vpop.eup %2107  ;;  %v1083_v58 = vadd.f32 1.0, %v2106_v52 }
 0x4ed   :  { %2111 = vrcp.f32 %v1082_v5 }
 0x4ee   :  { %2113 = vrcp.f32 %v1083_v58 }
 0x4f8   :  { %v2110_v62 = vpop.eup %2109 }
 0x4f9   :  { %v1092_v56 = vmul.f32 %v2110_v62, %v2108_v46 }
 0x4fa   :  { %v2112_v3 = vpop.eup %2111 }
 0x4fb   :  { %v1091_v1 = vmul.f32 %v2112_v3, %v2748_v63  ;;  %v2114_v10 = vpop.eup %2113  ;;  %v2874_v63 = vld [vmem:[%s3131_s2 + $0x8c] ss:$16 sps:$4 sm:$0xff]  }
 0x4fd   :  { %v2800_v60 = vadd.f32 %v1092_v56, %v1091_v1 }
 0x4ff   :  { %2115 = vtanh.f32 %v2800_v60 }
 0x50c   :  { %v2116_v7 = vpop.eup %2115 }
 0x50d   :  { %v1095_v11 = vmul.f32 %v2116_v7, %v2114_v10  ;;  %v2194_v7 = vld [vmem:[%s3131_s2 + $0x2c] ss:$16 sps:$4 sm:$0xff]  }
 0x50f   :  { %v1103_v51 = vpack.c.bf16 %v1095_v11, %v1095_v11  ;;  %v2195_v11 = vld [vmem:[%s3131_s2 + $0x20] ss:$16 sps:$4 sm:$0xff]  }
 0x511   :  { %1137 = vmatmul.mubr.bf16.vlgmr.msra.gmra.mxu0 %v1103_v51  ;;  %1178 = vmatmul.mubr.bf16.vlgmr.msra.gmra.mxu1 %v1103_v51  ;;  %v2196_v51 = vld [vmem:[%s3131_s2 + $0x28] ss:$16 sps:$4 sm:$0xff]  }
 0x512   :  { %1223 = vmatpush1.bf16.msra.mxu0 %v2806_v29  ;;  %1264 = vmatpush1.bf16.msra.mxu1 %v2812_v6 }
 0x513   :  { %1224 = vmatprep.subr.bf16.mxu0 %v2818_v19  ;;  %1265 = vmatprep.subr.bf16.mxu1 %v2824_v4 }
 0x514   :  { %1254 = vmatprep.mubr.bf16.mxu0 %v3162_v2  ;;  %1295 = vmatprep.mubr.bf16.mxu1 %v3162_v2 }
 0x516   :  { %1225 = vmatpush1.bf16.msra.mxu0 %v2832_v57  ;;  %1266 = vmatpush1.bf16.msra.mxu1 %v2838_v55 }
 0x517   :  { %1226 = vmatprep.subr.bf16.mxu0 %v2844_v48  ;;  %1267 = vmatprep.subr.bf16.mxu1 %v2850_v53 }
 0x51a   :  { %1227 = vmatpush1.bf16.msra.mxu0 %v2856_v61  ;;  %1268 = vmatpush1.bf16.msra.mxu1 %v2862_v47 }
 0x51b   :  { %1228 = vmatprep.subr.bf16.mxu0 %v2868_v59  ;;  %1269 = vmatprep.subr.bf16.mxu1 %v2874_v63 }
 0x51e   :  { %1229 = vmatpush1.bf16.msra.mxu0 %v2880_v50  ;;  %1270 = vmatpush1.bf16.msra.mxu1 %v2886_v38 }
 0x51f   :  { %1230 = vmatprep.subr.bf16.mxu0 %v2892_v0  ;;  %1271 = vmatprep.subr.bf16.mxu1 %v2898_v49 }
 0x522   :  { %1231 = vmatpush1.bf16.msra.mxu0 %v2904_v14  ;;  %1272 = vmatpush1.bf16.msra.mxu1 %v2910_v15 }
 0x523   :  { %1232 = vmatprep.subr.bf16.mxu0 %v2916_v16  ;;  %1273 = vmatprep.subr.bf16.mxu1 %v2922_v17 }
 0x526   :  { %1233 = vmatpush1.bf16.msra.mxu0 %v2928_v18  ;;  %1274 = vmatpush1.bf16.msra.mxu1 %v2934_v20 }
 0x527   :  { %1234 = vmatprep.subr.bf16.mxu0 %v2425_v36  ;;  %1275 = vmatprep.subr.bf16.mxu1 %v2432_v37 }
 0x52a   :  { %1235 = vmatpush1.bf16.msra.mxu0 %v2444_v39  ;;  %1276 = vmatpush1.bf16.msra.mxu1 %v2449_v40  ;;  %v3173_v40 = vld [vmem:[#allocation15_spill] sm:$0xff] }
 0x52b   :  { %1236 = vmatprep.subr.bf16.mxu0 %v2456_v41  ;;  %1277 = vmatprep.subr.bf16.mxu1 %v2461_v42 }
 0x52e   :  { %1237 = vmatpush1.bf16.msra.mxu0 %v2470_v43  ;;  %1278 = vmatpush1.bf16.msra.mxu1 %v2475_v44  ;;  %v3174_v44 = vld [vmem:[#allocation14_spill] sm:$0xff] }
 0x52f   :  { %1340 = vmatprep.subr.bf16.mxu0 %v2786_v12  ;;  %1381 = vmatprep.subr.bf16.mxu1 %v2792_v13  ;;  %v3175_v13 = vld [vmem:[#allocation16_spill] sm:$0xff] }
 0x5d1   :  { %v1138_v21 = vpop.f32.mrf.mxu0  ;;  %v1179_v36 = vpop.f32.mrf.mxu1 }
 0x5d2   :  { %v1186_v37 = vadd.f32 %v1138_v21, %v3172_v22  ;;  %v1188_v12 = vadd.f32 %v1179_v36, %v3174_v44 }
 0x5d3   :  { %v1140_v23 = vpop.f32.mrf.mxu0  ;;  %v1181_v39 = vpop.f32.mrf.mxu1 }
 0x5d4   :  { %v1867_v24 = vmul.f32 -1.442695, %v1186_v37  ;;  %v1187_v25 = vadd.f32 %v1140_v23, %v3173_v40  ;;  %v1869_v28 = vmul.f32 -1.442695, %v1188_v12  ;;  %v1189_v30 = vadd.f32 %v1181_v39, %v3175_v13  ;;  %v1999_v13 = vld [vmem:[%s3133_s4 + $0x74] ss:$8 sps:$4 sm:$0xff]  }
 0x5d5   :  { %v1142_v41 = vpop.f32.mrf.mxu0  ;;  %v1183_v26 = vpop.f32.mrf.mxu1 }
 0x5d6   :  { %2117 = vpow2.f32 %v1867_v24  ;;  %v1868_v42 = vmul.f32 -1.442695, %v1187_v25 }
 0x5d7   :  { %v1143_v43 = vpop.f32.mrf.mxu0  ;;  %v1184_v27 = vpop.f32.mrf.mxu1 }
 0x5d8   :  { %2119 = vpow2.f32 %v1868_v42 }
 0x5d9   :  { %2121 = vpow2.f32 %v1869_v28 }
 0x5da   :  { %2123 = vtanh.f32 %v1189_v30  ;;  %v1997_v30 = vld [vmem:[%s3133_s4 + $0x70] ss:$8 sps:$4 sm:$0xff]  }
 0x5e3   :  { %v2118_v31 = vpop.eup %2117 }
 0x5e4   :  { %v1199_v32 = vadd.f32 1.0, %v2118_v31  ;;  %v2002_v31 = vld [vmem:[%s3133_s4 + $0x64] ss:$8 sps:$4 sm:$0xff]  }
 0x5e5   :  { %v2120_v33 = vpop.eup %2119 }
 0x5e6   :  { %2125 = vrcp.f32 %v1199_v32  ;;  %v1200_v34 = vadd.f32 1.0, %v2120_v33  ;;  %v2122_v35 = vpop.eup %2121  ;;  %v2000_v32 = vld [vmem:[%s3133_s4 + $0x60] ss:$8 sps:$4 sm:$0xff]   ;;  %v2003_v33 = vld [vmem:[%s3133_s4 + $0x50] ss:$8 sps:$4 sm:$0xff]  }
 0x5e7   :  { %v2124_v8 = vpop.eup %2123  ;;  %v1201_v46 = vadd.f32 1.0, %v2122_v35  ;;  %v2006_v35 = vld [vmem:[%s3133_s4 + $0x40] ss:$8 sps:$4 sm:$0xff]  }
 0x5e8   :  { %2127 = vrcp.f32 %v1200_v34  ;;  %v2008_v34 = vld [vmem:[%s3133_s4 + $0x44] ss:$8 sps:$4 sm:$0xff]  }
 0x5e9   :  { %2129 = vrcp.f32 %v1201_v46  ;;  %v2017_v46 = vld [vmem:[%s3133_s4 + $0x14] ss:$8 sps:$4 sm:$0xff]  }
 0x5f3   :  { %v2126_v9 = vpop.eup %2125 }
 0x5f4   :  { %v1210_v5 = vmul.f32 %v2126_v9, %v2124_v8  ;;  %v2011_v8 = vld [vmem:[%s3133_s4 + $0x34] ss:$8 sps:$4 sm:$0xff]   ;;  %v2009_v9 = vld [vmem:[%s3133_s4 + $0x30] ss:$8 sps:$4 sm:$0xff]  }
 0x5f5   :  { %v2128_v52 = vpop.eup %2127 }
 0x5f6   :  { %v1209_v62 = vmul.f32 %v2128_v52, %v2800_v60  ;;  %v2130_v3 = vpop.eup %2129  ;;  %v2193_v60 = vld [vmem:[%s3131_s2 + $0x24] ss:$16 sps:$4 sm:$0xff]   ;;  %v2012_v52 = vld [vmem:[%s3133_s4 + $0x20] ss:$8 sps:$4 sm:$0xff]  }
 0x5f8   :  { %v2952_v56 = vadd.f32 %v1210_v5, %v1209_v62  ;;  %v2014_v5 = vld [vmem:[%s3133_s4 + $0x24] ss:$8 sps:$4 sm:$0xff]   ;;  %v2015_v62 = vld [vmem:[%s3133_s4 + $0x10] ss:$8 sps:$4 sm:$0xff]  }
 0x5fa   :  { %2131 = vtanh.f32 %v2952_v56 }
 0x607   :  { %v2132_v58 = vpop.eup %2131 }
 0x608   :  { %v1213_v1 = vmul.f32 %v2132_v58, %v2130_v3  ;;  %v2018_v3 = vld [vmem:[%s3133_s4] ss:$8 sps:$4 sm:$0xff]   ;;  %v2021_v58 = vld [vmem:[%s3134_s5 + $0x78] sm:$0xff]  }
 0x60a   :  { %v1221_v10 = vpack.c.bf16 %v1213_v1, %v1213_v1  ;;  %v2022_v1 = vld [vmem:[%s3134_s5 + $0x38] sm:$0xff]  }
 0x60c   :  { %1255 = vmatmul.mubr.bf16.vlgmr.msra.gmra.mxu0 %v1221_v10  ;;  %1296 = vmatmul.mubr.bf16.vlgmr.msra.gmra.mxu1 %v1221_v10  ;;  %v2023_v10 = vld [vmem:[%s3134_s5 + $0x70] sm:$0xff]  }
 0x60d   :  { %1341 = vmatpush1.bf16.msra.mxu0 %v2806_v29  ;;  %1382 = vmatpush1.bf16.msra.mxu1 %v2812_v6  ;;  %v2197_v29 = vld [vmem:[%s3131_s2 + $0x4] ss:$16 sps:$4 sm:$0xff]   ;;  %v2198_v6 = vld [vmem:[%s3131_s2 + $0xc] ss:$16 sps:$4 sm:$0xff]  }
 0x60e   :  { %1342 = vmatprep.subr.bf16.mxu0 %v2818_v19  ;;  %1383 = vmatprep.subr.bf16.mxu1 %v2824_v4  ;;  %v2199_v19 = vld [vmem:[%s3131_s2] ss:$16 sps:$4 sm:$0xff]   ;;  %v2200_v4 = vld [vmem:[%s3131_s2 + $0x8] ss:$16 sps:$4 sm:$0xff]  }
 0x60f   :  { %1372 = vmatprep.mubr.bf16.mxu0 %v3162_v2  ;;  %1413 = vmatprep.mubr.bf16.mxu1 %v3162_v2 }
 0x611   :  { %1343 = vmatpush1.bf16.msra.mxu0 %v2832_v57  ;;  %1384 = vmatpush1.bf16.msra.mxu1 %v2838_v55 }
 0x612   :  { %1344 = vmatprep.subr.bf16.mxu0 %v2844_v48  ;;  %1385 = vmatprep.subr.bf16.mxu1 %v2850_v53  ;;  %v3176_v48 = vld [vmem:[#allocation17_spill] sm:$0xff] }
 0x615   :  { %1345 = vmatpush1.bf16.msra.mxu0 %v2856_v61  ;;  %1386 = vmatpush1.bf16.msra.mxu1 %v2862_v47 }
 0x616   :  { %1346 = vmatprep.subr.bf16.mxu0 %v2868_v59  ;;  %1387 = vmatprep.subr.bf16.mxu1 %v2874_v63  ;;  %v3177_v63 = vld [vmem:[#allocation19_spill] sm:$0xff] }
 0x619   :  { %1347 = vmatpush1.bf16.msra.mxu0 %v2880_v50  ;;  %1388 = vmatpush1.bf16.msra.mxu1 %v2886_v38 }
 0x61a   :  { %1348 = vmatprep.subr.bf16.mxu0 %v2892_v0  ;;  %1389 = vmatprep.subr.bf16.mxu1 %v2898_v49 }
 0x61d   :  { %1349 = vmatpush1.bf16.msra.mxu0 %v2904_v14  ;;  %1390 = vmatpush1.bf16.msra.mxu1 %v2910_v15 }
 0x61e   :  { %1350 = vmatprep.subr.bf16.mxu0 %v2916_v16  ;;  %1391 = vmatprep.subr.bf16.mxu1 %v2922_v17  ;;  %v3178_v16 = vld [vmem:[#allocation18_spill] sm:$0xff] }
 0x621   :  { %1351 = vmatpush1.bf16.msra.mxu0 %v2928_v18  ;;  %1392 = vmatpush1.bf16.msra.mxu1 %v2934_v20  ;;  %v3179_v20 = vld [vmem:[#allocation20_spill] sm:$0xff] }
 0x622   :  { %1352 = vmatprep.subr.bf16.mxu0 %v2193_v60  ;;  %1393 = vmatprep.subr.bf16.mxu1 %v2194_v7  ;;  %v2024_v60 = vld [vmem:[%s3134_s5 + $0x30] sm:$0xff]   ;;  %v2025_v7 = vld [vmem:[%s3134_s5 + $0x68] sm:$0xff]  }
 0x625   :  { %1353 = vmatpush1.bf16.msra.mxu0 %v2195_v11  ;;  %1394 = vmatpush1.bf16.msra.mxu1 %v2196_v51  ;;  %v2026_v11 = vld [vmem:[%s3134_s5 + $0x28] sm:$0xff]   ;;  %v2027_v51 = vld [vmem:[%s3134_s5 + $0x60] sm:$0xff]  }
 0x626   :  { %1354 = vmatprep.subr.bf16.mxu0 %v2197_v29  ;;  %1395 = vmatprep.subr.bf16.mxu1 %v2198_v6  ;;  %v2028_v29 = vld [vmem:[%s3134_s5 + $0x20] sm:$0xff]   ;;  %v2029_v6 = vld [vmem:[%s3134_s5 + $0x58] sm:$0xff]  }
 0x629   :  { %1355 = vmatpush1.bf16.msra.mxu0 %v2199_v19  ;;  %1396 = vmatpush1.bf16.msra.mxu1 %v2200_v4  ;;  %v2030_v19 = vld [vmem:[%s3134_s5 + $0x18] sm:$0xff]   ;;  %v2031_v4 = vld [vmem:[%s3134_s5 + $0x50] sm:$0xff]  }
 0x62a   :  { %1558 = vmatprep.subr.bf16.mxu0 %v1999_v13  ;;  %1910 = vmatprep.subr.bf16.mxu1 %v2021_v58  ;;  %v2036_v13 = vld [vmem:[%s3134_s5] sm:$0xff]  }
 0x6cc   :  { %v1256_v57 = vpop.f32.mrf.mxu0  ;;  %v1297_v55 = vpop.f32.mrf.mxu1 }
 0x6cd   :  { %v1304_v53 = vadd.f32 %v1256_v57, %v3176_v48  ;;  %v1306_v17 = vadd.f32 %v1297_v55, %v3178_v16  ;;  %v2032_v57 = vld [vmem:[%s3134_s5 + $0x10] sm:$0xff]   ;;  %v3181_v16 = vld [vmem:[#allocation22_spill] sm:$0xff] }
 0x6ce   :  { %v1258_v61 = vpop.f32.mrf.mxu0  ;;  %v1299_v47 = vpop.f32.mrf.mxu1 }
 0x6cf   :  { %v1870_v59 = vmul.f32 -1.442695, %v1304_v53  ;;  %v1305_v50 = vadd.f32 %v1258_v61, %v3177_v63  ;;  %v1872_v18 = vmul.f32 -1.442695, %v1306_v17  ;;  %v1307_v21 = vadd.f32 %v1299_v47, %v3179_v20  ;;  %v3180_v53 = vld [vmem:[#allocation21_spill] sm:$0xff] }
 0x6d0   :  { %v1260_v38 = vpop.f32.mrf.mxu0  ;;  %v1301_v0 = vpop.f32.mrf.mxu1 }
 0x6d1   :  { %2133 = vpow2.f32 %v1870_v59  ;;  %v1871_v49 = vmul.f32 -1.442695, %v1305_v50 }
 0x6d2   :  { %v1261_v14 = vpop.f32.mrf.mxu0  ;;  %v1302_v15 = vpop.f32.mrf.mxu1 }
 0x6d3   :  { %2135 = vpow2.f32 %v1871_v49 }
 0x6d4   :  { %2137 = vpow2.f32 %v1872_v18 }
 0x6d5   :  { %2139 = vtanh.f32 %v1307_v21 }
 0x6de   :  { %v2134_v36 = vpop.eup %2133 }
 0x6df   :  { %v1317_v22 = vadd.f32 1.0, %v2134_v36 }
 0x6e0   :  { %v2136_v37 = vpop.eup %2135 }
 0x6e1   :  { %2141 = vrcp.f32 %v1317_v22  ;;  %v1318_v23 = vadd.f32 1.0, %v2136_v37  ;;  %v2138_v39 = vpop.eup %2137 }
 0x6e2   :  { %v2140_v24 = vpop.eup %2139  ;;  %v1319_v26 = vadd.f32 1.0, %v2138_v39 }
 0x6e3   :  { %2143 = vrcp.f32 %v1318_v23 }
 0x6e4   :  { %2145 = vrcp.f32 %v1319_v26 }
 0x6ee   :  { %v2142_v40 = vpop.eup %2141 }
 0x6ef   :  { %v1328_v25 = vmul.f32 %v2142_v40, %v2140_v24 }
 0x6f0   :  { %v2144_v41 = vpop.eup %2143 }
 0x6f1   :  { %v1327_v42 = vmul.f32 %v2144_v41, %v2952_v56  ;;  %v2146_v27 = vpop.eup %2145  ;;  %v2020_v56 = vld [vmem:[%s3133_s4 + $0x4] ss:$8 sps:$4 sm:$0xff]  }
 0x6f3   :  { %v3008_v43 = vadd.f32 %v1328_v25, %v1327_v42 }
 0x6f5   :  { %2147 = vtanh.f32 %v3008_v43 }
 0x702   :  { %v2148_v44 = vpop.eup %2147 }
 0x703   :  { %v1331_v12 = vmul.f32 %v2148_v44, %v2146_v27 }
 0x705   :  { %v1339_v28 = vpack.c.bf16 %v1331_v12, %v1331_v12  ;;  %v2033_v12 = vld [vmem:[%s3134_s5 + $0x48] sm:$0xff]  }
 0x707   :  { %1373 = vmatmul.mubr.bf16.vlgmr.msra.gmra.mxu0 %v1339_v28  ;;  %1414 = vmatmul.mubr.bf16.vlgmr.msra.gmra.mxu1 %v1339_v28  ;;  %v2034_v28 = vld [vmem:[%s3134_s5 + $0x8] sm:$0xff]  }
 0x708   :  { %1590 = vmatprep.mubr.bf16.mxu0 %v3162_v2  ;;  %1559 = vmatpush1.bf16.msra.mxu0 %v1997_v30  ;;  %v2005_v2 = vld [vmem:[%s3133_s4 + $0x54] ss:$8 sps:$4 sm:$0xff]   ;;  %v25_v30 = vld [vmem:[%s3132_s3 + $0x4] sm:$0x3] }
 0x709   :  { %1560 = vmatprep.subr.bf16.mxu0 %v2002_v31  ;;  %1911 = vmatpush3.bf16.msra.mxu1 %v2022_v1  ;;  %v3182_v31 = vld [vmem:[#allocation3_spill] sm:$0xff] }
 0x70a   :  { %1912 = vmatprep.subr.bf16.mxu1 %v2023_v10  ;;  %v1892_v10 = vld [vmem:[%s3132_s3 + $0x6] ss:$0 sm:$0xff] }
 0x70c   :  { %1561 = vmatpush1.bf16.msra.mxu0 %v2000_v32  ;;  %v3183_v32 = vsub.s32 0, %v3182_v31 }
 0x70d   :  { %1562 = vmatprep.subr.bf16.mxu0 %v2005_v2  ;;  %1913 = vmatpush3.bf16.msra.mxu1 %v2024_v60 }
 0x70e   :  { %1914 = vmatprep.subr.bf16.mxu1 %v2025_v7  ;;  %v1471_v2 = vrot.slane %v25_v30, %v3183_v32 }
 0x710   :  { %1563 = vmatpush1.bf16.msra.mxu0 %v2003_v33  ;;  %v3184_v33 = vsub.s32 1, %v3182_v31 }
 0x711   :  { %1564 = vmatprep.subr.bf16.mxu0 %v2008_v34  ;;  %1915 = vmatpush3.bf16.msra.mxu1 %v2026_v11 }
 0x712   :  { %1916 = vmatprep.subr.bf16.mxu1 %v2027_v51  ;;  %v1475_v34 = vrot.slane %v25_v30, %v3184_v33 }
 0x714   :  { %1565 = vmatpush1.bf16.msra.mxu0 %v2006_v35 }
 0x715   :  { %1566 = vmatprep.subr.bf16.mxu0 %v2011_v8  ;;  %1917 = vmatpush3.bf16.msra.mxu1 %v2028_v29 }
 0x716   :  { %1918 = vmatprep.subr.bf16.mxu1 %v2029_v6 }
 0x718   :  { %1567 = vmatpush1.bf16.msra.mxu0 %v2009_v9 }
 0x719   :  { %1568 = vmatprep.subr.bf16.mxu0 %v2014_v5  ;;  %1919 = vmatpush3.bf16.msra.mxu1 %v2030_v19 }
 0x71a   :  { %1920 = vmatprep.subr.bf16.mxu1 %v2031_v4 }
 0x71c   :  { %1569 = vmatpush1.bf16.msra.mxu0 %v2012_v52 }
 0x71d   :  { %1570 = vmatprep.subr.bf16.mxu0 %v2017_v46  ;;  %1921 = vmatpush3.bf16.msra.mxu1 %v2032_v57 }
 0x71e   :  { %1922 = vmatprep.subr.bf16.mxu1 %v2033_v12 }
 0x720   :  { %1571 = vmatpush1.bf16.msra.mxu0 %v2015_v62 }
 0x721   :  { %1572 = vmatprep.subr.bf16.mxu0 %v2020_v56  ;;  %1923 = vmatpush3.bf16.msra.mxu1 %v2034_v28 }
 0x724   :  { %1573 = vmatpush1.bf16.msra.mxu0 %v2018_v3 }
 0x7c7   :  { %v1374_v55 = vpop.f32.mrf.mxu0  ;;  %v1415_v48 = vpop.f32.mrf.mxu1 }
 0x7c8   :  { %v1422_v61 = vadd.f32 %v1374_v55, %v3180_v53  ;;  %v1424_v17 = vadd.f32 %v1415_v48, %v3181_v16 }
 0x7c9   :  { %v1376_v47 = vpop.f32.mrf.mxu0  ;;  %v1417_v59 = vpop.f32.mrf.mxu1 }
 0x7ca   :  { %v1873_v63 = vmul.f32 -1.442695, %v1422_v61  ;;  %v1423_v50 = vadd.f32 %v1376_v47, %v2612_v54  ;;  %v1875_v18 = vmul.f32 -1.442695, %v1424_v17  ;;  %v1425_v20 = vadd.f32 %v1417_v59, %v2615_v45 }
 0x7cb   :  { %v1378_v38 = vpop.f32.mrf.mxu0  ;;  %v1419_v0 = vpop.f32.mrf.mxu1 }
 0x7cc   :  { %2149 = vpow2.f32 %v1873_v63  ;;  %v1874_v49 = vmul.f32 -1.442695, %v1423_v50 }
 0x7cd   :  { %v1379_v14 = vpop.f32.mrf.mxu0  ;;  %v1420_v15 = vpop.f32.mrf.mxu1 }
 0x7ce   :  { %2151 = vpow2.f32 %v1874_v49 }
 0x7cf   :  { %2153 = vpow2.f32 %v1875_v18 }
 0x7d0   :  { %2155 = vtanh.f32 %v1425_v20 }
 0x7d9   :  { %v2150_v21 = vpop.eup %2149 }
 0x7da   :  { %v1435_v36 = vadd.f32 1.0, %v2150_v21 }
 0x7db   :  { %v2152_v22 = vpop.eup %2151 }
 0x7dc   :  { %2157 = vrcp.f32 %v1435_v36  ;;  %v1436_v37 = vadd.f32 1.0, %v2152_v22  ;;  %v2154_v54 = vpop.eup %2153 }
 0x7dd   :  { %v2156_v23 = vpop.eup %2155  ;;  %v1437_v25 = vadd.f32 1.0, %v2154_v54 }
 0x7de   :  { %2159 = vrcp.f32 %v1436_v37 }
 0x7df   :  { %2161 = vrcp.f32 %v1437_v25 }
 0x7e9   :  { %v2158_v39 = vpop.eup %2157 }
 0x7ea   :  { %v1446_v24 = vmul.f32 %v2158_v39, %v2156_v23 }
 0x7eb   :  { %v2160_v40 = vpop.eup %2159 }
 0x7ec   :  { %v1445_v41 = vmul.f32 %v2160_v40, %v3008_v43  ;;  %v2162_v45 = vpop.eup %2161  ;;  %v2035_v43 = vld [vmem:[%s3134_s5 + $0x40] sm:$0xff]  }
 0x7ed   :  { %1924 = vmatprep.subr.bf16.mxu1 %v2035_v43 }
 0x7ee   :  { %v1447_v26 = vadd.f32 %v1446_v24, %v1445_v41  ;;  %1925 = vmatpush3.bf16.msra.mxu1 %v2036_v13 }
 0x7f0   :  { %2163 = vtanh.f32 %v1447_v26 }
 0x7fd   :  { %v2164_v42 = vpop.eup %2163 }
 0x7fe   :  { %v1449_v27 = vmul.f32 %v2164_v42, %v2162_v45 }
 0x800   :  { %v1450_v44 = vpack.c.bf16 %v1449_v27, %v1449_v27 }
 0x802   :  { %1591 = vmatmul.mubr.bf16.vlgmr.msra.gmra.mxu0 %v1450_v44 }
 0x8c2   :  { %v1592_v35 = vpop.f32.mrf.mxu0 }
 0x8c3   :  { %v1593_v8 = vadd.f32 %v1592_v35, %v1471_v2 }
 0x8c4   :  { %v1594_v9 = vpop.f32.mrf.mxu0 }
 0x8c5   :  { %v1595_v5 = vadd.f32 %v1594_v9, %v1475_v34  ;;  %v1599_v52 = vmax.f32 %v1593_v8, 0.0 }
 0x8c6   :  { %v1596_v46 = vpop.f32.mrf.mxu0 }
 0x8c7   :  { %v1600_v62 = vmax.f32 %v1595_v5, 0.0  ;;  %v1601_v58 = vpack.c.bf16 %v1599_v52, %v1599_v52 }
 0x8c8   :  { %v1597_v56 = vpop.f32.mrf.mxu0 }
 0x8c9   :  { %v1602_v3 = vpack.c.bf16 %v1600_v62, %v1600_v62 }
 0x8cb   :  { %1769 = vmatprep.mubr.bf16.mxu1 %v1602_v3 }
 0x8cc   :  { %1770 = vmatmul.mubr.bf16.vlgmr.msra.gmra.mxu1 %v1601_v58 }
 0x98c   :  { %v1926_v1 = vpop.f32.mrf.mxu1 }
 0x98e   :  { %v1927_v60 = vpop.f32.mrf.mxu1 }
 0x98f   :  { %v1928_v7 = vadd.f32 %v1927_v60, %v1926_v1 }
 0x990   :  { %v1929_v11 = vpop.f32.mrf.mxu1 }
 0x991   :  { %v1772_v51 = vadd.f32 %v1928_v7, %v1892_v10 }
 0x992   :  { %v1930_v29 = vpop.f32.mrf.mxu1 }
 0x993   :  { %1786 = vst [vmem:[%s3135_s6] sm:$0xff] %v1772_v51  ;;  %1777 = vmax.xlane.f32.xlu0 %v1772_v51 }
 0xa1c   :  { %v1778_v6 = vpop.xlane.xlu0 %1777 }
 0xa1d   :  { %v1779_v19 = vsub.f32 %v1772_v51, %v1778_v6 }
 0xa1f   :  { %v1780_v4 = vmul.f32 1.442695, %v1779_v19 }
 0xa21   :  { %2165 = vpow2.f32 %v1780_v4 }
 0xa2e   :  { %v2166_v57 = vpop.eup %2165 }
 0xa2f   :  { %1782 = vadd.xlane.f32.xlu0 %v2166_v57 }
 0xab8   :  { %v1783_v55 = vpop.xlane.xlu0 %1782 }
 0xab9   :  { %2167 = vrcp.f32 %v1783_v55 }
 0xac6   :  { %v2168_v48 = vpop.eup %2167 }
 0xac7   :  { %v1785_v53 = vmul.f32 %v2168_v48, %v2166_v57 }
 0xac9   :  { %1909 = vst [vmem:[%s3135_s6 + $0x8] sm:$0xff] %v1785_v53 }

</bundles_post_ra>
